<compile_context>
chip_gen: v7x
topology: tpu7x:2x2x1
jax: 0.10.0
libtpu: 0.0.40
codegen_flags: <defaults>
</compile_context>

<pallas_src>
import functools

import jax
import jax.numpy as jnp
from jax.experimental import pallas as pl
from jax.experimental.pallas import tpu as pltpu

LN_EPS = 1e-6            # ViT-LR uses nn.LayerNorm(dim, eps=1e-6)
_MATMUL_DTYPE = jnp.bfloat16


def _layernorm(v, g, b):
    mu = jnp.mean(v, axis=-1, keepdims=True)
    var = jnp.mean((v - mu) ** 2, axis=-1, keepdims=True)
    return (v - mu) * jax.lax.rsqrt(var + LN_EPS) * g + b


def fused_stack_kernel(
    x_ref,
    ln1_g, ln1_b, w_qkv, b_qkv, wo, bo,
    ln2_g, ln2_b, w1, b1, w2, b2,
    o_ref,
    xs_ref,                      # VMEM scratch: (Bt, S, D) f32 running activations
    ctx_ref,                     # VMEM scratch: (Bt, S, D) bf16 attention contexts
    *, num_heads,
):
    blk = pl.program_id(1)
    n_blk = pl.num_programs(1)

    # Load x from HBM only once per batch tile (block axis is the inner grid dim).
    @pl.when(blk == 0)
    def _():
        xs_ref[...] = x_ref[...].astype(jnp.float32)

    x = xs_ref[...]                              # (Bt, S, D) f32
    Bt, S, D = x.shape
    Dh = D // num_heads
    x2 = x.reshape(Bt * S, D)                    # merge batch+seq for the big matmuls

    # ------------------------- attention sub-block -------------------------
    h = _layernorm(x2, ln1_g[0], ln1_b[0])
    # Fused QKV projection: one (Bt*S, D) x (D, 3D) bf16 matmul, f32 accumulate.
    qkv = jnp.dot(h.astype(_MATMUL_DTYPE), w_qkv[0],
                  preferred_element_type=jnp.float32) + b_qkv[0]      # (Bt*S, 3D)
    qkv = qkv.reshape(Bt, S, 3 * D)
    # NOTE: 1/sqrt(Dh) already folded into Wq / bq at trace time.

    for hd in range(num_heads):                  # static loop over heads
        lo = hd * Dh
        qh = qkv[:, :, lo:lo + Dh].astype(_MATMUL_DTYPE)               # (Bt, S, Dh)
        kh = qkv[:, :, D + lo:D + lo + Dh].astype(_MATMUL_DTYPE)
        vh = qkv[:, :, 2 * D + lo:2 * D + lo + Dh].astype(_MATMUL_DTYPE)
        # Batched over Bt; contract last axes directly (no explicit transpose of K).
        s = jnp.einsum('bqd,bkd->bqk', qh, kh,
                       preferred_element_type=jnp.float32)             # (Bt, S, S)
        s = s - jnp.max(s, axis=-1, keepdims=True)
        p = jnp.exp(s)
        p = p * pl.reciprocal(jnp.sum(p, axis=-1, keepdims=True), approx=True)
        ctx = jnp.einsum('bqk,bkd->bqd', p.astype(_MATMUL_DTYPE), vh,
                         preferred_element_type=jnp.float32)           # (Bt, S, Dh)
        # Park each head's context at its lane offset; single Wo matmul afterwards.
        ctx_ref[:, :, lo:lo + Dh] = ctx.astype(ctx_ref.dtype)

    ctx_all = ctx_ref[...].reshape(Bt * S, D)                          # bf16
    proj = jnp.dot(ctx_all, wo[0], preferred_element_type=jnp.float32) + bo[0]
    x2 = x2 + proj                               # residual (dropout = identity)

    # ------------------------ feed-forward sub-block ------------------------
    h2 = _layernorm(x2, ln2_g[0], ln2_b[0])
    ff = jnp.dot(h2.astype(_MATMUL_DTYPE), w1[0],
                 preferred_element_type=jnp.float32) + b1[0]
    # TODO(synk): if the PyTorch FFN uses exact nn.GELU() (erf), switch to approximate=False.
    ff = jax.nn.gelu(ff)
    ff = jnp.dot(ff.astype(_MATMUL_DTYPE), w2[0],
                 preferred_element_type=jnp.float32) + b2[0]
    x2 = x2 + ff                                 # residual (dropout = identity)

    xs_ref[...] = x2.reshape(Bt, S, D)

    @pl.when(blk == n_blk - 1)
    def _():
        o_ref[...] = x2.reshape(Bt, S, D).astype(o_ref.dtype)


def _stack_block_params(blocks, num_heads):
    """Stack per-block params along a leading block axis; fuse QKV; fold in 1/sqrt(Dh).

    All matmul weights are stored bf16 (halves weight DMA / VMEM); biases & LN stay f32.
    """
    D = blocks[0]["wq"].shape[0]
    Dh = D // num_heads
    scale = jnp.float32(1.0 / (Dh ** 0.5))

    def stk(fn, dtype):
        return jnp.stack([fn(bp).astype(dtype) for bp in blocks], axis=0)

    ln1_g = stk(lambda bp: bp["ln1_g"], jnp.float32)
    ln1_b = stk(lambda bp: bp["ln1_b"], jnp.float32)
    w_qkv = stk(lambda bp: jnp.concatenate(
        [bp["wq"] * scale, bp["wk"], bp["wv"]], axis=-1), _MATMUL_DTYPE)
    b_qkv = stk(lambda bp: jnp.concatenate(
        [bp["bq"] * scale, bp["bk"], bp["bv"]], axis=-1), jnp.float32)
    wo = stk(lambda bp: bp["wo"], _MATMUL_DTYPE)
    bo = stk(lambda bp: bp["bo"], jnp.float32)
    ln2_g = stk(lambda bp: bp["ln2_g"], jnp.float32)
    ln2_b = stk(lambda bp: bp["ln2_b"], jnp.float32)
    w1 = stk(lambda bp: bp["w1"], _MATMUL_DTYPE)
    b1 = stk(lambda bp: bp["b1"], jnp.float32)
    w2 = stk(lambda bp: bp["w2"], _MATMUL_DTYPE)
    b2 = stk(lambda bp: bp["b2"], jnp.float32)
    return [ln1_g, ln1_b, w_qkv, b_qkv, wo, bo, ln2_g, ln2_b, w1, b1, w2, b2]


def _nbytes(shape, dtype):
    n = 1
    for d in shape:
        n *= int(d)
    return n * jnp.dtype(dtype).itemsize


def _vmem_capacity_bytes():
    try:
        return int(pltpu.get_tpu_info().vmem_capacity_bytes)
    except Exception:
        return 64 * 1024 * 1024      # conservative (v7x per-TC VMEM)


def _pick_batch_tile(B, max_bt=8):
    """Largest divisor of B <= max_bt; amortizes weight streaming across Bt batch rows."""
    for bt in range(min(B, max_bt), 0, -1):
        if B % bt == 0:
            return bt
    return 1


def run_blocks(x, blocks, num_heads, batch_tile=None):
    """Run a list of transformer blocks in ONE fused Pallas kernel. x: (B, S, D)."""
    if not blocks:
        return x
    B, S, D = x.shape
    nblk = len(blocks)
    ff_dim = blocks[0]["w1"].shape[1]
    Bt = batch_tile if batch_tile is not None else _pick_batch_tile(B)
    assert B % Bt == 0
    stacked = _stack_block_params(blocks, num_heads)

    x_spec = pl.BlockSpec((Bt, S, D), lambda b, k: (b, 0, 0))
    w_specs = [pl.BlockSpec((1,) + w.shape[1:], lambda b, k: (k, 0, 0)) for w in stacked]

    # --- VMEM budget: actual block shapes + in-kernel f32 temporaries, capped per generation.
    act_bytes = _nbytes((Bt, S, D), jnp.float32)
    weight_bytes = sum(_nbytes(w.shape[1:], w.dtype) for w in stacked)
    temp_bytes = 4 * (Bt * S * (3 * D + ff_dim + 2 * D) + Bt * S * S)   # qkv/ff/h/scores (f32)
    need = (2 * _nbytes((Bt, S, D), x.dtype)      # input x (double-buffered)
            + 2 * _nbytes((Bt, S, D), x.dtype)    # output block (double-buffered)
            + 2 * weight_bytes                    # per-block weights (double-buffered)
            + act_bytes                           # xs scratch (f32)
            + act_bytes // 2                      # ctx scratch (bf16)
            + temp_bytes)
    cap = _vmem_capacity_bytes()
    vmem_limit = int(min(0.85 * cap, max(32 * 1024 * 1024, int(1.25 * need))))

    # --- Advisory cost estimate for XLA's scheduler around this long-running call.
    flops = 2 * B * nblk * (S * D * 3 * D          # QKV projection
                            + 2 * S * S * D        # QK^T + P*V (all heads)
                            + S * D * D            # output projection
                            + 2 * S * D * ff_dim)  # FFN
    transcendentals = B * nblk * (num_heads * S * S      # exp in softmax
                                  + S * ff_dim           # gelu tanh
                                  + 2 * S)               # layernorm rsqrt
    bytes_accessed = ((B // Bt) * sum(_nbytes(w.shape, w.dtype) for w in stacked)
                      + 2 * _nbytes(x.shape, x.dtype))
    cost = pl.CostEstimate(flops=int(flops),
                           transcendentals=int(transcendentals),
                           bytes_accessed=int(bytes_accessed))

    kernel = functools.partial(fused_stack_kernel, num_heads=num_heads)
    return pl.pallas_call(
        kernel,
        out_shape=jax.ShapeDtypeStruct((B, S, D), x.dtype),
        grid_spec=pltpu.PrefetchScalarGridSpec(
            num_scalar_prefetch=0,
            grid=(B // Bt, nblk),    # batch outer (parallel), block inner (sequential)
            in_specs=[x_spec] + w_specs,
            out_specs=pl.BlockSpec((Bt, S, D), lambda b, k: (b, 0, 0)),
            scratch_shapes=[pltpu.VMEM((Bt, S, D), jnp.float32),
                            pltpu.VMEM((Bt, S, D), _MATMUL_DTYPE)],
        ),
        compiler_params=pltpu.CompilerParams(
            dimension_semantics=("parallel", "arbitrary"),
            vmem_limit_bytes=vmem_limit,
        ),
        cost_estimate=cost,
    )(x, *stacked)


def transformer_forward(x_tuple, params, latent_replay_block, num_heads,
                        get_activation=False):
    """Mirrors Transformer.forward: x_tuple = (is_pattern, x)."""
    is_pattern, x = x_tuple
    if is_pattern:
        blocks_to_run = params
    else:
        assert latent_replay_block > -1, "Latent replay block not set."
        blocks_to_run = params[latent_replay_block:]

    if not get_activation:
        return run_blocks(x, blocks_to_run, num_heads)

    activation = None
    split = latent_replay_block
    if 0 <= split < len(blocks_to_run):
        x = run_blocks(x, blocks_to_run[:split], num_heads)
        activation = x                       # captured before running block `split`
        x = run_blocks(x, blocks_to_run[split:], num_heads)
    else:
        x = run_blocks(x, blocks_to_run, num_heads)
    return x, activation


def init_params(key, num_blocks, dim, ff_dim):
    """Deterministic init. Linear weights stored as (in, out) == W.T of torch."""
    params = []
    for b in range(num_blocks):
        kb = jax.random.fold_in(key, b)
        ks = jax.random.split(kb, 6)
        std = 0.02
        blk = {
            "ln1_g": jnp.ones((1, dim), jnp.float32),
            "ln1_b": jnp.zeros((1, dim), jnp.float32),
            "wq": std * jax.random.normal(ks[0], (dim, dim), jnp.float32),
            "bq": jnp.zeros((1, dim), jnp.float32),
            "wk": std * jax.random.normal(ks[1], (dim, dim), jnp.float32),
            "bk": jnp.zeros((1, dim), jnp.float32),
            "wv": std * jax.random.normal(ks[2], (dim, dim), jnp.float32),
            "bv": jnp.zeros((1, dim), jnp.float32),
            "wo": std * jax.random.normal(ks[3], (dim, dim), jnp.float32),
            "bo": jnp.zeros((1, dim), jnp.float32),
            "ln2_g": jnp.ones((1, dim), jnp.float32),
            "ln2_b": jnp.zeros((1, dim), jnp.float32),
            "w1": std * jax.random.normal(ks[4], (dim, ff_dim), jnp.float32),
            "b1": jnp.zeros((1, ff_dim), jnp.float32),
            "w2": std * jax.random.normal(ks[5], (ff_dim, dim), jnp.float32),
            "b2": jnp.zeros((1, dim), jnp.float32),
        }
        params.append(blk)
    return params


def _reference_forward(x, blocks, num_heads):
    """Pure-JAX reference of the block stack (f32), for a loose numerical check."""
    def ln(v, g, b):
        mu = jnp.mean(v, -1, keepdims=True)
        var = jnp.mean((v - mu) ** 2, -1, keepdims=True)
        return (v - mu) / jnp.sqrt(var + LN_EPS) * g + b

    B, S, D = x.shape
    H = num_heads
    Dh = D // H
    for bp in blocks:
        h = ln(x, bp["ln1_g"], bp["ln1_b"])
        q = (h @ bp["wq"] + bp["bq"]).reshape(B, S, H, Dh).transpose(0, 2, 1, 3)
        k = (h @ bp["wk"] + bp["bk"]).reshape(B, S, H, Dh).transpose(0, 2, 1, 3)
        v = (h @ bp["wv"] + bp["bv"]).reshape(B, S, H, Dh).transpose(0, 2, 1, 3)
        s = (q @ jnp.swapaxes(k, -1, -2)) / jnp.sqrt(jnp.float32(Dh))
        p = jax.nn.softmax(s, axis=-1)
        ctx = (p @ v).transpose(0, 2, 1, 3).reshape(B, S, D)
        x = x + ctx @ bp["wo"] + bp["bo"]
        h2 = ln(x, bp["ln2_g"], bp["ln2_b"])
        ff = jax.nn.gelu(h2 @ bp["w1"] + bp["b1"])
        x = x + ff @ bp["w2"] + bp["b2"]
    return x


if __name__ == "__main__":
    # Small, module-consistent shapes. (Real deployments should pad D to a multiple of 128
    # and S to a multiple of 16 for full lane/sublane occupancy.)
    num_blocks = 2
    dim = 32
    num_heads = 4
    tgt_len = 8          # sequence length
    ff_dim = 64
    latent_replay_block = 1
    batch = 2

    key = jax.random.PRNGKey(0)
    kx, kp = jax.random.split(key)
    x = jax.random.normal(kx, (batch, tgt_len, dim), jnp.float32)
    params = init_params(kp, num_blocks, dim, ff_dim)

    # is_pattern=True -> run all blocks (as in the PyTorch forward).
    out = transformer_forward((True, x), params, latent_replay_block, num_heads)
    out = jax.block_until_ready(out)

    # Latent-replay activation capture path.
    out2, act = transformer_forward((True, x), params, latent_replay_block,
                                    num_heads, get_activation=True)
    jax.block_until_ready(out2)

    assert out.shape == (batch, tgt_len, dim)
    assert act is not None and act.shape == (batch, tgt_len, dim)

    # Loose check against the pure-JAX reference (kernel uses bf16 matmuls + approx recip).
    ref = _reference_forward(x, params, num_heads)
    assert jnp.allclose(out, ref, rtol=5e-2, atol=5e-2), "kernel deviates from reference"
    assert jnp.allclose(out2, ref, rtol=5e-2, atol=5e-2), "split-path deviates from reference"

    print("KERNEL_OK")
</pallas_src>

<mosaic_0001>
module attributes {stable_mosaic.version = 11 : i64} {
  func.func @fused_stack_kernel(%arg0: i32, %arg1: i32, %arg2: memref<2x8x32xf32, #tpu.memory_space<vmem>>, %arg3: memref<1x1x32xf32, #tpu.memory_space<vmem>>, %arg4: memref<1x1x32xf32, #tpu.memory_space<vmem>>, %arg5: memref<1x32x96xbf16, #tpu.memory_space<vmem>>, %arg6: memref<1x1x96xf32, #tpu.memory_space<vmem>>, %arg7: memref<1x32x32xbf16, #tpu.memory_space<vmem>>, %arg8: memref<1x1x32xf32, #tpu.memory_space<vmem>>, %arg9: memref<1x1x32xf32, #tpu.memory_space<vmem>>, %arg10: memref<1x1x32xf32, #tpu.memory_space<vmem>>, %arg11: memref<1x32x64xbf16, #tpu.memory_space<vmem>>, %arg12: memref<1x1x64xf32, #tpu.memory_space<vmem>>, %arg13: memref<1x64x32xbf16, #tpu.memory_space<vmem>>, %arg14: memref<1x1x32xf32, #tpu.memory_space<vmem>>, %arg15: memref<2x8x32xf32, #tpu.memory_space<vmem>>, %arg16: memref<2x8x32xf32, #tpu.memory_space<vmem>>, %arg17: memref<2x8x32xbf16, #tpu.memory_space<vmem>>) attributes {dimension_semantics = [#tpu.dimension_semantics<parallel>, #tpu.dimension_semantics<arbitrary>], iteration_bounds = array<i64: 1, 2>, scalar_prefetch = 0 : i64, scratch_operands = 2 : i64, tpu.core_type = #tpu.core_type<tc>, window_params = [{transform_indices = @transform_0, window_bounds = array<i64: 2, 8, 32>}, {transform_indices = @transform_1, window_bounds = array<i64: 1, 1, 32>}, {transform_indices = @transform_2, window_bounds = array<i64: 1, 1, 32>}, {transform_indices = @transform_3, window_bounds = array<i64: 1, 32, 96>}, {transform_indices = @transform_4, window_bounds = array<i64: 1, 1, 96>}, {transform_indices = @transform_5, window_bounds = array<i64: 1, 32, 32>}, {transform_indices = @transform_6, window_bounds = array<i64: 1, 1, 32>}, {transform_indices = @transform_7, window_bounds = array<i64: 1, 1, 32>}, {transform_indices = @transform_8, window_bounds = array<i64: 1, 1, 32>}, {transform_indices = @transform_9, window_bounds = array<i64: 1, 32, 64>}, {transform_indices = @transform_10, window_bounds = array<i64: 1, 1, 64>}, {transform_indices = @transform_11, window_bounds = array<i64: 1, 64, 32>}, {transform_indices = @transform_12, window_bounds = array<i64: 1, 1, 32>}, {transform_indices = @transform_13, window_bounds = array<i64: 2, 8, 32>}]} {
    %c0_i32 = arith.constant 0 : i32
    %0 = arith.cmpi eq, %arg1, %c0_i32 : i32
    %1 = arith.extui %0 : i1 to i32
    %c0_i32_0 = arith.constant 0 : i32
    %2 = arith.cmpi ne, %1, %c0_i32_0 : i32
    scf.if %2 {
      %c0_88 = arith.constant 0 : index
      %c0_89 = arith.constant 0 : index
      %c0_90 = arith.constant 0 : index
      %195 = vector.load %arg2[%c0_88, %c0_89, %c0_90] : memref<2x8x32xf32, #tpu.memory_space<vmem>>, vector<2x8x32xf32>
      %c0_91 = arith.constant 0 : index
      %c0_92 = arith.constant 0 : index
      %c0_93 = arith.constant 0 : index
      %196 = vector.load %arg16[%c0_91, %c0_92, %c0_93] : memref<2x8x32xf32, #tpu.memory_space<vmem>>, vector<2x8x32xf32>
      tpu.vector_store %arg16[%c0_91, %c0_92, %c0_93], %195 {strides = array<i32>} : memref<2x8x32xf32, #tpu.memory_space<vmem>>, vector<2x8x32xf32>,
    } else {
    }
    %c0 = arith.constant 0 : index
    %c0_1 = arith.constant 0 : index
    %c0_2 = arith.constant 0 : index
    %3 = vector.load %arg16[%c0, %c0_1, %c0_2] : memref<2x8x32xf32, #tpu.memory_space<vmem>>, vector<2x8x32xf32>
    %4 = vector.shape_cast %3 : vector<2x8x32xf32> to vector<16x32xf32>
    %c0_3 = arith.constant 0 : index
    %c0_4 = arith.constant 0 : index
    %c0_5 = arith.constant 0 : index
    %5 = vector.load %arg3[%c0_3, %c0_4, %c0_5] : memref<1x1x32xf32, #tpu.memory_space<vmem>>, vector<1x1x32xf32>
    %6 = vector.shape_cast %5 : vector<1x1x32xf32> to vector<1x32xf32>
    %c0_6 = arith.constant 0 : index
    %c0_7 = arith.constant 0 : index
    %c0_8 = arith.constant 0 : index
    %7 = vector.load %arg4[%c0_6, %c0_7, %c0_8] : memref<1x1x32xf32, #tpu.memory_space<vmem>>, vector<1x1x32xf32>
    %8 = vector.shape_cast %7 : vector<1x1x32xf32> to vector<1x32xf32>
    %cst = arith.constant dense<0.000000e+00> : vector<16xf32>
    %9 = vector.multi_reduction <add>, %4, %cst [1] : vector<16x32xf32> to vector<16xf32>
    %10 = vector.shape_cast %9 : vector<16xf32> to vector<16x1xf32>
    %cst_9 = arith.constant 3.200000e+01 : f32
    %11 = vector.broadcast %cst_9 : f32 to vector<16x1xf32>
    %12 = arith.divf %10, %11 : vector<16x1xf32>
    %13 = vector.broadcast %12 : vector<16x1xf32> to vector<16x32xf32>
    %14 = arith.subf %4, %13 : vector<16x32xf32>
    %15 = arith.mulf %14, %14 : vector<16x32xf32>
    %cst_10 = arith.constant dense<0.000000e+00> : vector<16xf32>
    %16 = vector.multi_reduction <add>, %15, %cst_10 [1] : vector<16x32xf32> to vector<16xf32>
    %17 = vector.shape_cast %16 : vector<16xf32> to vector<16x1xf32>
    %cst_11 = arith.constant 3.200000e+01 : f32
    %18 = vector.broadcast %cst_11 : f32 to vector<16x1xf32>
    %19 = arith.divf %17, %18 : vector<16x1xf32>
    %20 = vector.broadcast %12 : vector<16x1xf32> to vector<16x32xf32>
    %21 = arith.subf %4, %20 : vector<16x32xf32>
    %cst_12 = arith.constant 9.99999997E-7 : f32
    %22 = vector.broadcast %cst_12 : f32 to vector<16x1xf32>
    %23 = arith.addf %19, %22 : vector<16x1xf32>
    %24 = math.rsqrt %23 : vector<16x1xf32>
    %25 = vector.broadcast %24 : vector<16x1xf32> to vector<16x32xf32>
    %26 = arith.mulf %21, %25 : vector<16x32xf32>
    %27 = vector.broadcast %6 : vector<1x32xf32> to vector<16x32xf32>
    %28 = arith.mulf %26, %27 : vector<16x32xf32>
    %29 = vector.broadcast %8 : vector<1x32xf32> to vector<16x32xf32>
    %30 = arith.addf %28, %29 : vector<16x32xf32>
    %31 = arith.truncf %30 : vector<16x32xf32> to vector<16x32xbf16>
    %c0_13 = arith.constant 0 : index
    %c0_14 = arith.constant 0 : index
    %c0_15 = arith.constant 0 : index
    %32 = vector.load %arg5[%c0_13, %c0_14, %c0_15] : memref<1x32x96xbf16, #tpu.memory_space<vmem>>, vector<1x32x96xbf16>
    %33 = vector.shape_cast %32 : vector<1x32x96xbf16> to vector<32x96xbf16>
    %cst_16 = arith.constant dense<0.000000e+00> : vector<16x96xf32>
    %34 = tpu.matmul %31, %33, %cst_16 {dimension_numbers = #tpu.dot_dimension_numbers<[1], [0], [0], [1], [0, 0, 1, 1], [], []>} : vector<16x32xbf16>, vector<32x96xbf16>, vector<16x96xf32> -> vector<16x96xf32>
    %c0_17 = arith.constant 0 : index
    %c0_18 = arith.constant 0 : index
    %c0_19 = arith.constant 0 : index
    %35 = vector.load %arg6[%c0_17, %c0_18, %c0_19] : memref<1x1x96xf32, #tpu.memory_space<vmem>>, vector<1x1x96xf32>
    %36 = vector.shape_cast %35 : vector<1x1x96xf32> to vector<1x96xf32>
    %37 = vector.broadcast %36 : vector<1x96xf32> to vector<16x96xf32>
    %38 = arith.addf %34, %37 : vector<16x96xf32>
    %39 = vector.shape_cast %38 : vector<16x96xf32> to vector<2x8x96xf32>
    %40 = vector.extract_strided_slice %39 {offsets = [0, 0, 0], sizes = [2, 8, 8], strides = [1, 1, 1]} : vector<2x8x96xf32> to vector<2x8x8xf32>
    %41 = arith.truncf %40 : vector<2x8x8xf32> to vector<2x8x8xbf16>
    %42 = vector.extract_strided_slice %39 {offsets = [0, 0, 32], sizes = [2, 8, 8], strides = [1, 1, 1]} : vector<2x8x96xf32> to vector<2x8x8xf32>
    %43 = arith.truncf %42 : vector<2x8x8xf32> to vector<2x8x8xbf16>
    %44 = vector.extract_strided_slice %39 {offsets = [0, 0, 64], sizes = [2, 8, 8], strides = [1, 1, 1]} : vector<2x8x96xf32> to vector<2x8x8xf32>
    %45 = arith.truncf %44 : vector<2x8x8xf32> to vector<2x8x8xbf16>
    "tpu.trace_start"() <{level = 10 : i32, message = "bqd,bkd->bqk"}> : () -> ()
    %cst_20 = arith.constant dense<0.000000e+00> : vector<2x8x8xf32>
    %46 = tpu.matmul %41, %43, %cst_20 {dimension_numbers = #tpu.dot_dimension_numbers<[2], [2], [1], [1], [0, 0, 0, 1, 1, 1], [0], [0]>} : vector<2x8x8xbf16>, vector<2x8x8xbf16>, vector<2x8x8xf32> -> vector<2x8x8xf32>
    "tpu.trace_stop"() : () -> ()
    %cst_21 = arith.constant dense<0xFF800000> : vector<2x8xf32>
    %47 = vector.multi_reduction <maximumf>, %46, %cst_21 [2] : vector<2x8x8xf32> to vector<2x8xf32>
    %48 = vector.shape_cast %47 : vector<2x8xf32> to vector<2x8x1xf32>
    %49 = vector.broadcast %48 : vector<2x8x1xf32> to vector<2x8x8xf32>
    %50 = arith.subf %46, %49 : vector<2x8x8xf32>
    %51 = math.exp %50 : vector<2x8x8xf32>
    %cst_22 = arith.constant dense<0.000000e+00> : vector<2x8xf32>
    %52 = vector.multi_reduction <add>, %51, %cst_22 [2] : vector<2x8x8xf32> to vector<2x8xf32>
    %53 = vector.shape_cast %52 : vector<2x8xf32> to vector<2x8x1xf32>
    %54 = tpu.reciprocal %53 {approx = true} : vector<2x8x1xf32> -> vector<2x8x1xf32>
    %55 = vector.broadcast %54 : vector<2x8x1xf32> to vector<2x8x8xf32>
    %56 = arith.mulf %51, %55 : vector<2x8x8xf32>
    %57 = arith.truncf %56 : vector<2x8x8xf32> to vector<2x8x8xbf16>
    "tpu.trace_start"() <{level = 10 : i32, message = "bqk,bkd->bqd"}> : () -> ()
    %cst_23 = arith.constant dense<0.000000e+00> : vector<2x8x8xf32>
    %58 = tpu.matmul %57, %45, %cst_23 {dimension_numbers = #tpu.dot_dimension_numbers<[2], [1], [1], [2], [0, 0, 0, 1, 1, 2], [0], [0]>} : vector<2x8x8xbf16>, vector<2x8x8xbf16>, vector<2x8x8xf32> -> vector<2x8x8xf32>
    "tpu.trace_stop"() : () -> ()
    %59 = arith.truncf %58 : vector<2x8x8xf32> to vector<2x8x8xbf16>
    %c0_24 = arith.constant 0 : index
    %c0_25 = arith.constant 0 : index
    %c0_26 = arith.constant 0 : index
    %60 = vector.load %arg17[%c0_24, %c0_25, %c0_26] : memref<2x8x32xbf16, #tpu.memory_space<vmem>>, vector<2x8x8xbf16>
    tpu.vector_store %arg17[%c0_24, %c0_25, %c0_26], %59 {strides = array<i32>} : memref<2x8x32xbf16, #tpu.memory_space<vmem>>, vector<2x8x8xbf16>,
    %61 = vector.extract_strided_slice %39 {offsets = [0, 0, 8], sizes = [2, 8, 8], strides = [1, 1, 1]} : vector<2x8x96xf32> to vector<2x8x8xf32>
    %62 = arith.truncf %61 : vector<2x8x8xf32> to vector<2x8x8xbf16>
    %63 = vector.extract_strided_slice %39 {offsets = [0, 0, 40], sizes = [2, 8, 8], strides = [1, 1, 1]} : vector<2x8x96xf32> to vector<2x8x8xf32>
    %64 = arith.truncf %63 : vector<2x8x8xf32> to vector<2x8x8xbf16>
    %65 = vector.extract_strided_slice %39 {offsets = [0, 0, 72], sizes = [2, 8, 8], strides = [1, 1, 1]} : vector<2x8x96xf32> to vector<2x8x8xf32>
    %66 = arith.truncf %65 : vector<2x8x8xf32> to vector<2x8x8xbf16>
    "tpu.trace_start"() <{level = 10 : i32, message = "bqd,bkd->bqk"}> : () -> ()
    %cst_27 = arith.constant dense<0.000000e+00> : vector<2x8x8xf32>
    %67 = tpu.matmul %62, %64, %cst_27 {dimension_numbers = #tpu.dot_dimension_numbers<[2], [2], [1], [1], [0, 0, 0, 1, 1, 1], [0], [0]>} : vector<2x8x8xbf16>, vector<2x8x8xbf16>, vector<2x8x8xf32> -> vector<2x8x8xf32>
    "tpu.trace_stop"() : () -> ()
    %cst_28 = arith.constant dense<0xFF800000> : vector<2x8xf32>
    %68 = vector.multi_reduction <maximumf>, %67, %cst_28 [2] : vector<2x8x8xf32> to vector<2x8xf32>
    %69 = vector.shape_cast %68 : vector<2x8xf32> to vector<2x8x1xf32>
    %70 = vector.broadcast %69 : vector<2x8x1xf32> to vector<2x8x8xf32>
    %71 = arith.subf %67, %70 : vector<2x8x8xf32>
    %72 = math.exp %71 : vector<2x8x8xf32>
    %cst_29 = arith.constant dense<0.000000e+00> : vector<2x8xf32>
    %73 = vector.multi_reduction <add>, %72, %cst_29 [2] : vector<2x8x8xf32> to vector<2x8xf32>
    %74 = vector.shape_cast %73 : vector<2x8xf32> to vector<2x8x1xf32>
    %75 = tpu.reciprocal %74 {approx = true} : vector<2x8x1xf32> -> vector<2x8x1xf32>
    %76 = vector.broadcast %75 : vector<2x8x1xf32> to vector<2x8x8xf32>
    %77 = arith.mulf %72, %76 : vector<2x8x8xf32>
    %78 = arith.truncf %77 : vector<2x8x8xf32> to vector<2x8x8xbf16>
    "tpu.trace_start"() <{level = 10 : i32, message = "bqk,bkd->bqd"}> : () -> ()
    %cst_30 = arith.constant dense<0.000000e+00> : vector<2x8x8xf32>
    %79 = tpu.matmul %78, %66, %cst_30 {dimension_numbers = #tpu.dot_dimension_numbers<[2], [1], [1], [2], [0, 0, 0, 1, 1, 2], [0], [0]>} : vector<2x8x8xbf16>, vector<2x8x8xbf16>, vector<2x8x8xf32> -> vector<2x8x8xf32>
    "tpu.trace_stop"() : () -> ()
    %80 = arith.truncf %79 : vector<2x8x8xf32> to vector<2x8x8xbf16>
    %c0_31 = arith.constant 0 : index
    %c0_32 = arith.constant 0 : index
    %c8 = arith.constant 8 : index
    %81 = vector.load %arg17[%c0_31, %c0_32, %c8] : memref<2x8x32xbf16, #tpu.memory_space<vmem>>, vector<2x8x8xbf16>
    tpu.vector_store %arg17[%c0_31, %c0_32, %c8], %80 {strides = array<i32>} : memref<2x8x32xbf16, #tpu.memory_space<vmem>>, vector<2x8x8xbf16>,
    %82 = vector.extract_strided_slice %39 {offsets = [0, 0, 16], sizes = [2, 8, 8], strides = [1, 1, 1]} : vector<2x8x96xf32> to vector<2x8x8xf32>
    %83 = arith.truncf %82 : vector<2x8x8xf32> to vector<2x8x8xbf16>
    %84 = vector.extract_strided_slice %39 {offsets = [0, 0, 48], sizes = [2, 8, 8], strides = [1, 1, 1]} : vector<2x8x96xf32> to vector<2x8x8xf32>
    %85 = arith.truncf %84 : vector<2x8x8xf32> to vector<2x8x8xbf16>
    %86 = vector.extract_strided_slice %39 {offsets = [0, 0, 80], sizes = [2, 8, 8], strides = [1, 1, 1]} : vector<2x8x96xf32> to vector<2x8x8xf32>
    %87 = arith.truncf %86 : vector<2x8x8xf32> to vector<2x8x8xbf16>
    "tpu.trace_start"() <{level = 10 : i32, message = "bqd,bkd->bqk"}> : () -> ()
    %cst_33 = arith.constant dense<0.000000e+00> : vector<2x8x8xf32>
    %88 = tpu.matmul %83, %85, %cst_33 {dimension_numbers = #tpu.dot_dimension_numbers<[2], [2], [1], [1], [0, 0, 0, 1, 1, 1], [0], [0]>} : vector<2x8x8xbf16>, vector<2x8x8xbf16>, vector<2x8x8xf32> -> vector<2x8x8xf32>
    "tpu.trace_stop"() : () -> ()
    %cst_34 = arith.constant dense<0xFF800000> : vector<2x8xf32>
    %89 = vector.multi_reduction <maximumf>, %88, %cst_34 [2] : vector<2x8x8xf32> to vector<2x8xf32>
    %90 = vector.shape_cast %89 : vector<2x8xf32> to vector<2x8x1xf32>
    %91 = vector.broadcast %90 : vector<2x8x1xf32> to vector<2x8x8xf32>
    %92 = arith.subf %88, %91 : vector<2x8x8xf32>
    %93 = math.exp %92 : vector<2x8x8xf32>
    %cst_35 = arith.constant dense<0.000000e+00> : vector<2x8xf32>
    %94 = vector.multi_reduction <add>, %93, %cst_35 [2] : vector<2x8x8xf32> to vector<2x8xf32>
    %95 = vector.shape_cast %94 : vector<2x8xf32> to vector<2x8x1xf32>
    %96 = tpu.reciprocal %95 {approx = true} : vector<2x8x1xf32> -> vector<2x8x1xf32>
    %97 = vector.broadcast %96 : vector<2x8x1xf32> to vector<2x8x8xf32>
    %98 = arith.mulf %93, %97 : vector<2x8x8xf32>
    %99 = arith.truncf %98 : vector<2x8x8xf32> to vector<2x8x8xbf16>
    "tpu.trace_start"() <{level = 10 : i32, message = "bqk,bkd->bqd"}> : () -> ()
    %cst_36 = arith.constant dense<0.000000e+00> : vector<2x8x8xf32>
    %100 = tpu.matmul %99, %87, %cst_36 {dimension_numbers = #tpu.dot_dimension_numbers<[2], [1], [1], [2], [0, 0, 0, 1, 1, 2], [0], [0]>} : vector<2x8x8xbf16>, vector<2x8x8xbf16>, vector<2x8x8xf32> -> vector<2x8x8xf32>
    "tpu.trace_stop"() : () -> ()
    %101 = arith.truncf %100 : vector<2x8x8xf32> to vector<2x8x8xbf16>
    %c0_37 = arith.constant 0 : index
    %c0_38 = arith.constant 0 : index
    %c16 = arith.constant 16 : index
    %102 = vector.load %arg17[%c0_37, %c0_38, %c16] : memref<2x8x32xbf16, #tpu.memory_space<vmem>>, vector<2x8x8xbf16>
    tpu.vector_store %arg17[%c0_37, %c0_38, %c16], %101 {strides = array<i32>} : memref<2x8x32xbf16, #tpu.memory_space<vmem>>, vector<2x8x8xbf16>,
    %103 = vector.extract_strided_slice %39 {offsets = [0, 0, 24], sizes = [2, 8, 8], strides = [1, 1, 1]} : vector<2x8x96xf32> to vector<2x8x8xf32>
    %104 = arith.truncf %103 : vector<2x8x8xf32> to vector<2x8x8xbf16>
    %105 = vector.extract_strided_slice %39 {offsets = [0, 0, 56], sizes = [2, 8, 8], strides = [1, 1, 1]} : vector<2x8x96xf32> to vector<2x8x8xf32>
    %106 = arith.truncf %105 : vector<2x8x8xf32> to vector<2x8x8xbf16>
    %107 = vector.extract_strided_slice %39 {offsets = [0, 0, 88], sizes = [2, 8, 8], strides = [1, 1, 1]} : vector<2x8x96xf32> to vector<2x8x8xf32>
    %108 = arith.truncf %107 : vector<2x8x8xf32> to vector<2x8x8xbf16>
    "tpu.trace_start"() <{level = 10 : i32, message = "bqd,bkd->bqk"}> : () -> ()
    %cst_39 = arith.constant dense<0.000000e+00> : vector<2x8x8xf32>
    %109 = tpu.matmul %104, %106, %cst_39 {dimension_numbers = #tpu.dot_dimension_numbers<[2], [2], [1], [1], [0, 0, 0, 1, 1, 1], [0], [0]>} : vector<2x8x8xbf16>, vector<2x8x8xbf16>, vector<2x8x8xf32> -> vector<2x8x8xf32>
    "tpu.trace_stop"() : () -> ()
    %cst_40 = arith.constant dense<0xFF800000> : vector<2x8xf32>
    %110 = vector.multi_reduction <maximumf>, %109, %cst_40 [2] : vector<2x8x8xf32> to vector<2x8xf32>
    %111 = vector.shape_cast %110 : vector<2x8xf32> to vector<2x8x1xf32>
    %112 = vector.broadcast %111 : vector<2x8x1xf32> to vector<2x8x8xf32>
    %113 = arith.subf %109, %112 : vector<2x8x8xf32>
    %114 = math.exp %113 : vector<2x8x8xf32>
    %cst_41 = arith.constant dense<0.000000e+00> : vector<2x8xf32>
    %115 = vector.multi_reduction <add>, %114, %cst_41 [2] : vector<2x8x8xf32> to vector<2x8xf32>
    %116 = vector.shape_cast %115 : vector<2x8xf32> to vector<2x8x1xf32>
    %117 = tpu.reciprocal %116 {approx = true} : vector<2x8x1xf32> -> vector<2x8x1xf32>
    %118 = vector.broadcast %117 : vector<2x8x1xf32> to vector<2x8x8xf32>
    %119 = arith.mulf %114, %118 : vector<2x8x8xf32>
    %120 = arith.truncf %119 : vector<2x8x8xf32> to vector<2x8x8xbf16>
    "tpu.trace_start"() <{level = 10 : i32, message = "bqk,bkd->bqd"}> : () -> ()
    %cst_42 = arith.constant dense<0.000000e+00> : vector<2x8x8xf32>
    %121 = tpu.matmul %120, %108, %cst_42 {dimension_numbers = #tpu.dot_dimension_numbers<[2], [1], [1], [2], [0, 0, 0, 1, 1, 2], [0], [0]>} : vector<2x8x8xbf16>, vector<2x8x8xbf16>, vector<2x8x8xf32> -> vector<2x8x8xf32>
    "tpu.trace_stop"() : () -> ()
    %122 = arith.truncf %121 : vector<2x8x8xf32> to vector<2x8x8xbf16>
    %c0_43 = arith.constant 0 : index
    %c0_44 = arith.constant 0 : index
    %c24 = arith.constant 24 : index
    %123 = vector.load %arg17[%c0_43, %c0_44, %c24] : memref<2x8x32xbf16, #tpu.memory_space<vmem>>, vector<2x8x8xbf16>
    tpu.vector_store %arg17[%c0_43, %c0_44, %c24], %122 {strides = array<i32>} : memref<2x8x32xbf16, #tpu.memory_space<vmem>>, vector<2x8x8xbf16>,
    %c0_45 = arith.constant 0 : index
    %c0_46 = arith.constant 0 : index
    %c0_47 = arith.constant 0 : index
    %124 = vector.load %arg17[%c0_45, %c0_46, %c0_47] : memref<2x8x32xbf16, #tpu.memory_space<vmem>>, vector<2x8x32xbf16>
    %125 = vector.shape_cast %124 : vector<2x8x32xbf16> to vector<16x32xbf16>
    %c0_48 = arith.constant 0 : index
    %c0_49 = arith.constant 0 : index
    %c0_50 = arith.constant 0 : index
    %126 = vector.load %arg7[%c0_48, %c0_49, %c0_50] : memref<1x32x32xbf16, #tpu.memory_space<vmem>>, vector<1x32x32xbf16>
    %127 = vector.shape_cast %126 : vector<1x32x32xbf16> to vector<32x32xbf16>
    %cst_51 = arith.constant dense<0.000000e+00> : vector<16x32xf32>
    %128 = tpu.matmul %125, %127, %cst_51 {dimension_numbers = #tpu.dot_dimension_numbers<[1], [0], [0], [1], [0, 0, 1, 1], [], []>} : vector<16x32xbf16>, vector<32x32xbf16>, vector<16x32xf32> -> vector<16x32xf32>
    %c0_52 = arith.constant 0 : index
    %c0_53 = arith.constant 0 : index
    %c0_54 = arith.constant 0 : index
    %129 = vector.load %arg8[%c0_52, %c0_53, %c0_54] : memref<1x1x32xf32, #tpu.memory_space<vmem>>, vector<1x1x32xf32>
    %130 = vector.shape_cast %129 : vector<1x1x32xf32> to vector<1x32xf32>
    %131 = vector.broadcast %130 : vector<1x32xf32> to vector<16x32xf32>
    %132 = arith.addf %128, %131 : vector<16x32xf32>
    %133 = arith.addf %4, %132 : vector<16x32xf32>
    %c0_55 = arith.constant 0 : index
    %c0_56 = arith.constant 0 : index
    %c0_57 = arith.constant 0 : index
    %134 = vector.load %arg9[%c0_55, %c0_56, %c0_57] : memref<1x1x32xf32, #tpu.memory_space<vmem>>, vector<1x1x32xf32>
    %135 = vector.shape_cast %134 : vector<1x1x32xf32> to vector<1x32xf32>
    %c0_58 = arith.constant 0 : index
    %c0_59 = arith.constant 0 : index
    %c0_60 = arith.constant 0 : index
    %136 = vector.load %arg10[%c0_58, %c0_59, %c0_60] : memref<1x1x32xf32, #tpu.memory_space<vmem>>, vector<1x1x32xf32>
    %137 = vector.shape_cast %136 : vector<1x1x32xf32> to vector<1x32xf32>
    %cst_61 = arith.constant dense<0.000000e+00> : vector<16xf32>
    %138 = vector.multi_reduction <add>, %133, %cst_61 [1] : vector<16x32xf32> to vector<16xf32>
    %139 = vector.shape_cast %138 : vector<16xf32> to vector<16x1xf32>
    %cst_62 = arith.constant 3.200000e+01 : f32
    %140 = vector.broadcast %cst_62 : f32 to vector<16x1xf32>
    %141 = arith.divf %139, %140 : vector<16x1xf32>
    %142 = vector.broadcast %141 : vector<16x1xf32> to vector<16x32xf32>
    %143 = arith.subf %133, %142 : vector<16x32xf32>
    %144 = arith.mulf %143, %143 : vector<16x32xf32>
    %cst_63 = arith.constant dense<0.000000e+00> : vector<16xf32>
    %145 = vector.multi_reduction <add>, %144, %cst_63 [1] : vector<16x32xf32> to vector<16xf32>
    %146 = vector.shape_cast %145 : vector<16xf32> to vector<16x1xf32>
    %cst_64 = arith.constant 3.200000e+01 : f32
    %147 = vector.broadcast %cst_64 : f32 to vector<16x1xf32>
    %148 = arith.divf %146, %147 : vector<16x1xf32>
    %149 = vector.broadcast %141 : vector<16x1xf32> to vector<16x32xf32>
    %150 = arith.subf %133, %149 : vector<16x32xf32>
    %cst_65 = arith.constant 9.99999997E-7 : f32
    %151 = vector.broadcast %cst_65 : f32 to vector<16x1xf32>
    %152 = arith.addf %148, %151 : vector<16x1xf32>
    %153 = math.rsqrt %152 : vector<16x1xf32>
    %154 = vector.broadcast %153 : vector<16x1xf32> to vector<16x32xf32>
    %155 = arith.mulf %150, %154 : vector<16x32xf32>
    %156 = vector.broadcast %135 : vector<1x32xf32> to vector<16x32xf32>
    %157 = arith.mulf %155, %156 : vector<16x32xf32>
    %158 = vector.broadcast %137 : vector<1x32xf32> to vector<16x32xf32>
    %159 = arith.addf %157, %158 : vector<16x32xf32>
    %160 = arith.truncf %159 : vector<16x32xf32> to vector<16x32xbf16>
    %c0_66 = arith.constant 0 : index
    %c0_67 = arith.constant 0 : index
    %c0_68 = arith.constant 0 : index
    %161 = vector.load %arg11[%c0_66, %c0_67, %c0_68] : memref<1x32x64xbf16, #tpu.memory_space<vmem>>, vector<1x32x64xbf16>
    %162 = vector.shape_cast %161 : vector<1x32x64xbf16> to vector<32x64xbf16>
    %cst_69 = arith.constant dense<0.000000e+00> : vector<16x64xf32>
    %163 = tpu.matmul %160, %162, %cst_69 {dimension_numbers = #tpu.dot_dimension_numbers<[1], [0], [0], [1], [0, 0, 1, 1], [], []>} : vector<16x32xbf16>, vector<32x64xbf16>, vector<16x64xf32> -> vector<16x64xf32>
    %c0_70 = arith.constant 0 : index
    %c0_71 = arith.constant 0 : index
    %c0_72 = arith.constant 0 : index
    %164 = vector.load %arg12[%c0_70, %c0_71, %c0_72] : memref<1x1x64xf32, #tpu.memory_space<vmem>>, vector<1x1x64xf32>
    %165 = vector.shape_cast %164 : vector<1x1x64xf32> to vector<1x64xf32>
    %166 = vector.broadcast %165 : vector<1x64xf32> to vector<16x64xf32>
    %167 = arith.addf %163, %166 : vector<16x64xf32>
    %168 = arith.mulf %167, %167 : vector<16x64xf32>
    %169 = arith.mulf %167, %168 : vector<16x64xf32>
    %cst_73 = arith.constant 4.471500e-02 : f32
    %170 = vector.broadcast %cst_73 : f32 to vector<16x64xf32>
    %171 = arith.mulf %170, %169 : vector<16x64xf32>
    %172 = arith.addf %167, %171 : vector<16x64xf32>
    %cst_74 = arith.constant 0.797884583 : f32
    %173 = vector.broadcast %cst_74 : f32 to vector<16x64xf32>
    %174 = arith.mulf %173, %172 : vector<16x64xf32>
    %175 = math.tanh %174 : vector<16x64xf32>
    %cst_75 = arith.constant 1.000000e+00 : f32
    %176 = vector.broadcast %cst_75 : f32 to vector<16x64xf32>
    %177 = arith.addf %176, %175 : vector<16x64xf32>
    %cst_76 = arith.constant 5.000000e-01 : f32
    %178 = vector.broadcast %cst_76 : f32 to vector<16x64xf32>
    %179 = arith.mulf %178, %177 : vector<16x64xf32>
    %180 = arith.mulf %167, %179 : vector<16x64xf32>
    %181 = arith.truncf %180 : vector<16x64xf32> to vector<16x64xbf16>
    %c0_77 = arith.constant 0 : index
    %c0_78 = arith.constant 0 : index
    %c0_79 = arith.constant 0 : index
    %182 = vector.load %arg13[%c0_77, %c0_78, %c0_79] : memref<1x64x32xbf16, #tpu.memory_space<vmem>>, vector<1x64x32xbf16>
    %183 = vector.shape_cast %182 : vector<1x64x32xbf16> to vector<64x32xbf16>
    %cst_80 = arith.constant dense<0.000000e+00> : vector<16x32xf32>
    %184 = tpu.matmul %181, %183, %cst_80 {dimension_numbers = #tpu.dot_dimension_numbers<[1], [0], [0], [1], [0, 0, 1, 1], [], []>} : vector<16x64xbf16>, vector<64x32xbf16>, vector<16x32xf32> -> vector<16x32xf32>
    %c0_81 = arith.constant 0 : index
    %c0_82 = arith.constant 0 : index
    %c0_83 = arith.constant 0 : index
    %185 = vector.load %arg14[%c0_81, %c0_82, %c0_83] : memref<1x1x32xf32, #tpu.memory_space<vmem>>, vector<1x1x32xf32>
    %186 = vector.shape_cast %185 : vector<1x1x32xf32> to vector<1x32xf32>
    %187 = vector.broadcast %186 : vector<1x32xf32> to vector<16x32xf32>
    %188 = arith.addf %184, %187 : vector<16x32xf32>
    %189 = arith.addf %133, %188 : vector<16x32xf32>
    %190 = vector.shape_cast %189 : vector<16x32xf32> to vector<2x8x32xf32>
    %c0_84 = arith.constant 0 : index
    %c0_85 = arith.constant 0 : index
    %c0_86 = arith.constant 0 : index
    %191 = vector.load %arg16[%c0_84, %c0_85, %c0_86] : memref<2x8x32xf32, #tpu.memory_space<vmem>>, vector<2x8x32xf32>
    tpu.vector_store %arg16[%c0_84, %c0_85, %c0_86], %190 {strides = array<i32>} : memref<2x8x32xf32, #tpu.memory_space<vmem>>, vector<2x8x32xf32>,
    %c1_i32 = arith.constant 1 : i32
    %192 = arith.cmpi eq, %arg1, %c1_i32 : i32
    %193 = arith.extui %192 : i1 to i32
    %c0_i32_87 = arith.constant 0 : i32
    %194 = arith.cmpi ne, %193, %c0_i32_87 : i32
    scf.if %194 {
      %195 = vector.shape_cast %189 : vector<16x32xf32> to vector<2x8x32xf32>
      %c0_88 = arith.constant 0 : index
      %c0_89 = arith.constant 0 : index
      %c0_90 = arith.constant 0 : index
      %196 = vector.load %arg15[%c0_88, %c0_89, %c0_90] : memref<2x8x32xf32, #tpu.memory_space<vmem>>, vector<2x8x32xf32>
      tpu.vector_store %arg15[%c0_88, %c0_89, %c0_90], %195 {strides = array<i32>} : memref<2x8x32xf32, #tpu.memory_space<vmem>>, vector<2x8x32xf32>,
    } else {
    }
    return
  }
  func.func @transform_0(%arg0: i32, %arg1: i32) -> (i32, i32, i32) {
    %c0_i32 = arith.constant 0 : i32
    %c0_i32_0 = arith.constant 0 : i32
    %c0_i32_1 = arith.constant 0 : i32
    return %arg0, %c0_i32, %c0_i32_0 : i32, i32, i32
  }
  func.func @transform_1(%arg0: i32, %arg1: i32) -> (i32, i32, i32) {
    %c0_i32 = arith.constant 0 : i32
    %c0_i32_0 = arith.constant 0 : i32
    %c0_i32_1 = arith.constant 0 : i32
    return %arg1, %c0_i32, %c0_i32_0 : i32, i32, i32
  }
  func.func @transform_2(%arg0: i32, %arg1: i32) -> (i32, i32, i32) {
    %c0_i32 = arith.constant 0 : i32
    %c0_i32_0 = arith.constant 0 : i32
    %c0_i32_1 = arith.constant 0 : i32
    return %arg1, %c0_i32, %c0_i32_0 : i32, i32, i32
  }
  func.func @transform_3(%arg0: i32, %arg1: i32) -> (i32, i32, i32) {
    %c0_i32 = arith.constant 0 : i32
    %c0_i32_0 = arith.constant 0 : i32
    %c0_i32_1 = arith.constant 0 : i32
    return %arg1, %c0_i32, %c0_i32_0 : i32, i32, i32
  }
  func.func @transform_4(%arg0: i32, %arg1: i32) -> (i32, i32, i32) {
    %c0_i32 = arith.constant 0 : i32
    %c0_i32_0 = arith.constant 0 : i32
    %c0_i32_1 = arith.constant 0 : i32
    return %arg1, %c0_i32, %c0_i32_0 : i32, i32, i32
  }
  func.func @transform_5(%arg0: i32, %arg1: i32) -> (i32, i32, i32) {
    %c0_i32 = arith.constant 0 : i32
    %c0_i32_0 = arith.constant 0 : i32
    %c0_i32_1 = arith.constant 0 : i32
    return %arg1, %c0_i32, %c0_i32_0 : i32, i32, i32
  }
  func.func @transform_6(%arg0: i32, %arg1: i32) -> (i32, i32, i32) {
    %c0_i32 = arith.constant 0 : i32
    %c0_i32_0 = arith.constant 0 : i32
    %c0_i32_1 = arith.constant 0 : i32
    return %arg1, %c0_i32, %c0_i32_0 : i32, i32, i32
  }
  func.func @transform_7(%arg0: i32, %arg1: i32) -> (i32, i32, i32) {
    %c0_i32 = arith.constant 0 : i32
    %c0_i32_0 = arith.constant 0 : i32
    %c0_i32_1 = arith.constant 0 : i32
    return %arg1, %c0_i32, %c0_i32_0 : i32, i32, i32
  }
  func.func @transform_8(%arg0: i32, %arg1: i32) -> (i32, i32, i32) {
    %c0_i32 = arith.constant 0 : i32
    %c0_i32_0 = arith.constant 0 : i32
    %c0_i32_1 = arith.constant 0 : i32
    return %arg1, %c0_i32, %c0_i32_0 : i32, i32, i32
  }
  func.func @transform_9(%arg0: i32, %arg1: i32) -> (i32, i32, i32) {
    %c0_i32 = arith.constant 0 : i32
    %c0_i32_0 = arith.constant 0 : i32
    %c0_i32_1 = arith.constant 0 : i32
    return %arg1, %c0_i32, %c0_i32_0 : i32, i32, i32
  }
  func.func @transform_10(%arg0: i32, %arg1: i32) -> (i32, i32, i32) {
    %c0_i32 = arith.constant 0 : i32
    %c0_i32_0 = arith.constant 0 : i32
    %c0_i32_1 = arith.constant 0 : i32
    return %arg1, %c0_i32, %c0_i32_0 : i32, i32, i32
  }
  func.func @transform_11(%arg0: i32, %arg1: i32) -> (i32, i32, i32) {
    %c0_i32 = arith.constant 0 : i32
    %c0_i32_0 = arith.constant 0 : i32
    %c0_i32_1 = arith.constant 0 : i32
    return %arg1, %c0_i32, %c0_i32_0 : i32, i32, i32
  }
  func.func @transform_12(%arg0: i32, %arg1: i32) -> (i32, i32, i32) {
    %c0_i32 = arith.constant 0 : i32
    %c0_i32_0 = arith.constant 0 : i32
    %c0_i32_1 = arith.constant 0 : i32
    return %arg1, %c0_i32, %c0_i32_0 : i32, i32, i32
  }
  func.func @transform_13(%arg0: i32, %arg1: i32) -> (i32, i32, i32) {
    %c0_i32 = arith.constant 0 : i32
    %c0_i32_0 = arith.constant 0 : i32
    %c0_i32_1 = arith.constant 0 : i32
    return %arg0, %c0_i32, %c0_i32_0 : i32, i32, i32
  }
}

</mosaic_0001>

<bundles_post_ra>
// kernel: tpu_custom_call.1
= control target key start
LH: loop header
LB: loop body
LE: loop exit
PB: predicated region body
PF: predicated region fallthrough
CT: control target
= control target key end

     0   :  { %s3534_s0 = inlined_call_operand.hbm [shape: f32[2,8,32], index: 0, kind: input, shape index: {}]   ;;  %s3535_s1 = inlined_call_operand.vmem [shape: f32[2,1,32], index: 1, kind: input, shape index: {}]   ;;  %s3536_s2 = inlined_call_operand.vmem [shape: f32[2,1,32], index: 2, kind: input, shape index: {}]   ;;  %s3537_s3 = inlined_call_operand.vmem [shape: bf16[2,32,96], index: 3, kind: input, shape index: {}]   ;;  %s3538_s4 = inlined_call_operand.vmem [shape: f32[2,1,96], index: 4, kind: input, shape index: {}]   ;;  %s3539_s5 = inlined_call_operand.vmem [shape: bf16[2,32,32], index: 5, kind: input, shape index: {}]   ;;  %s3540_s6 = inlined_call_operand.vmem [shape: f32[2,1,32], index: 6, kind: input, shape index: {}]   ;;  %s3541_s7 = inlined_call_operand.hbm [shape: f32[2,1,32], index: 7, kind: input, shape index: {}]   ;;  %s3542_s8 = inlined_call_operand.hbm [shape: f32[2,1,32], index: 8, kind: input, shape index: {}]   ;;  %s3543_s9 = inlined_call_operand.vmem [shape: bf16[2,32,64], index: 9, kind: input, shape index: {}]   ;;  %s3544_s10 = inlined_call_operand.hbm [shape: f32[2,1,64], index: 10, kind: input, shape index: {}]   ;;  %s3545_s11 = inlined_call_operand.vmem [shape: bf16[2,64,32], index: 11, kind: input, shape index: {}]   ;;  %s3546_s12 = inlined_call_operand.vmem [shape: f32[2,1,32], index: 12, kind: input, shape index: {}]   ;;  %s3547_s13 = inlined_call_operand.hbm [shape: f32[2,8,32], index: 13, kind: output, shape index: {}]  }
   0x1   :  { %3560 = sst [smem:[#allocation22_spill]] %s3534_s0 }
   0x2   :  { %3561 = sst [smem:[#allocation23_spill]] %s3537_s3 }
   0x3   :  { %3562 = sst [smem:[#allocation24_spill]] %s3539_s5 }
   0x4   :  { %3563 = sst [smem:[#allocation25_spill]] %s3540_s6 }
   0x5   :  { %3564 = sst [smem:[#allocation26_spill]] %s3541_s7 }
   0x6   :  { %3565 = sst [smem:[#allocation27_spill]] %s3542_s8 }
   0x7   :  { %3566 = sst [smem:[#allocation28_spill]] %s3543_s9 }
   0x8   :  { %3567 = sst [smem:[#allocation29_spill]] %s3545_s11 }
   0x9   :  { %3568 = sst [smem:[#allocation30_spill]] %s3546_s12 }
   0xa   :  { %3569 = sst [smem:[#allocation31_spill]] %s3547_s13 }
   0xb   :  { %18 = vsyncpa [#allocation5], 0 }
   0xc   :  { %19 = vsyncpa [#allocation8], 0 }
   0xd   :  { %21 = vsyncpa [#allocation8 + $0x1], 0 }
   0xe   :  { %22 = vsyncpa [#allocation11], 0 }
   0xf   :  { %24 = vsyncpa [#allocation11 + $0x1], 0 }
  0x10   :  { %25 = vsyncpa [#allocation6], 0  ;;  %s2992_s25 = smov 0   ;;  %s2994_s26 = smov 0  }
  0x11   :  { %s2996_s27 = smov 0   ;;  %s2998_s28 = smov 0  }
  0x12   :  { %s3000_s29 = smov 0   ;;  %s3002_s30 = smov 0  }
  0x13 LB: > { %3570 = sst [smem:[#allocation17_spill]] %s2884_s27  ;;  %s40_s14 = sadd.s32 1, %s2892_s29  ;;  %s2896_s30 = sphi %s3002_s30, %s31_s30   ;;  %s2892_s29 = sphi %s3000_s29, %s3613_s29   ;;  %s2888_s28 = sphi %s2998_s28, %s3609_s28   ;;  %s2884_s27 = sphi %s2996_s27, %s3608_s27   ;;  %s2880_s26 = sphi %s2994_s26, %s3612_s26   ;;  %s2876_s25 = sphi %s2992_s25, %s3611_s25  }
  0x14   : > { %3571 = sst [smem:[#allocation18_spill]] %s2892_s29  ;;  %s232_s15 = sadd.s32 1, %s2884_s27 }
  0x15   : > { %3572 = sst [smem:[#allocation19_spill]] %s2896_s30  ;;  %p41_p0 = scmp.ge.s32.totalorder %s40_s14, 2 }
  0x16   : > { %p239_p1 = scmp.ne.s32.totalorder %s2884_s27, %s2880_s26  ;;  %p240_p2 = scmp.eq.s32.totalorder %s2896_s30, 0 }
  0x17   : > { %s3615_s14 = smov (%p41_p0, %s40_s14), 0  ;;  %p2562_p4 = scmp.lt.s32.totalorder %s2896_s30, 2 }
  0x18   : > { %3573 = sst [smem:[#allocation20_spill]] %s3615_s14  ;;  %p241_p3 = por %p240_p2, %p239_p1 }
  0x19   : > { %s229_s16 = ssub.s32 %s2892_s29, %s3615_s14  ;;  %s481_s17 = sand.u32 1, %s2896_s30  }
  0x1a   : > { %p230_p5 = scmp.eq.s32.totalorder %s229_s16, 0  ;;  %s3034_s18 = sand.u32 1, %s2884_s27  }
  0x1b   : > { %s3037_s19 = sshll.u32 %s2892_s29, 4  ;;  %s3575_s7 = sld [smem:[#allocation26_spill]] }
  0x1c   : > { %s3040_s20 = scalar_select %p230_p5, %s2884_s27, %s232_s15  }
  0x1d   : > { %s484_s24 = scalar_lea.vmem [#allocation7], %s3034_s18  ;;  %p3049_p6 = pnand %p2562_p4, %p241_p3 }
  0x1e   : > { %3574 = sst [smem:[#allocation21_spill]] %s3040_s20  ;;  %s491_s14 = sshll.u32 %s484_s24, 4  ;;  %s3053_s14 = int_to_ptr.vmem [resolvable:$true] %s491_s14 }
  0x1f   : > { %s3576_s16 = scalar_select %p3049_p6, 1, 0 }
  0x20   : > { %s3055_s15 = scalar_lea.sflag [#allocation8], %s481_s17  ;;  %p3061_p8 = pneg %p3049_p6 }
  0x21   : > { %s3046_s23 = scalar_lea.hbm %s3575_s7, %s3037_s19  ;;  %s2695_s20 = scalar_lea.hbm %s3575_s7, 32 }
  0x22   : > { %s2690_s29 = scalar_lea.hbm %s3046_s23, 16  ;;  %p2696_p11 = scmp.lt.u32.totalorder %s3046_s23, %s3575_s7 }
  0x23   : > { %p2691_p7 = scmp.ne.s32.totalorder %s3046_s23, %s2690_s29  ;;  %p2697_p12 = scmp.lt.u32.totalorder %s2695_s20, %s2690_s29 }
  0x24   : > { %s3577_s21 = scalar_select %p3061_p8, 1, 0 }
  0x25   : > { %p2693_p9 = pnand %p3061_p8, %p2691_p7  ;;  %p2698_p13 = por %p2697_p12, %p2696_p11 }
  0x26   : > { %p2699_p0 = scmp.lt.u32.totalorder %s2690_s29, %s3046_s23 }
  0x27   : > { %p2694_p10 = pneg %p2693_p9 }
  0x28   : > { %p2700_p1 = por %p2699_p0, %p2698_p13 }
  0x2a   : > { %p2701_p2 = pnand %p2700_p1, %p2694_p10 }
  0x2c   : > { %2704 = shalt.err (!%p2701_p2)
}
  0x2d   : > { %s2705_s17 = scalar_lea.vmem %s3053_s14, 16  ;;  %s2898_s22 = smov [#allocation7]  }
  0x2e   : > { %p2706_p3 = scmp.ne.s32.totalorder %s3053_s14, %s2705_s17  ;;  %s2710_s24 = sshll.u32 %s2898_s22, 4  ;;  %s2711_s24 = int_to_ptr.vmem [resolvable:$false] %s2710_s24 }
  0x2f   : > { %s2712_s13 = scalar_lea.vmem %s2711_s24, 32  ;;  %p2713_p7 = scmp.lt.s32.totalorder %s3053_s14, %s2711_s24 }
  0x30   : > { %p2708_p4 = pnand %p2706_p3, %p3061_p8  ;;  %p2714_p9 = scmp.lt.s32.totalorder %s2712_s13, %s2705_s17 }
  0x32   : > { %p2709_p5 = pneg %p2708_p4  ;;  %p2715_p11 = por %p2714_p9, %p2713_p7 }
  0x34   : > { %p2716_p12 = pnand %p2715_p11, %p2709_p5 }
  0x36   : > { %2719 = shalt.err (!%p2716_p12)
}
  0x37   : > { %2554 = dma.hbm_to_vmem [thread:$0]  (!%p3049_p6), %s3046_s23, 16, %s3053_s14, %s3055_s15  }
  0x38   : > { %s3086_s27 = sadd.s32 4294967295, %s2896_s30   ;;  %p245_p10 = scmp.ne.s32.totalorder %s2880_s26, %s2876_s25 }
  0x39   : > { %p3553_p13 = scmp.eq.s32.totalorder %s3086_s27, 0  ;;  %p2278_p0 = scmp.ge.s32.totalorder %s2896_s30, 1 }
  0x3a   : > { %p412_p1 = scmp.lt.s32.totalorder %s2896_s30, 3  ;;  %s2899_s14 = smov [#allocation4]  }
  0x3b   : > { %p3095_p2 = por %p3553_p13, %p245_p10  ;;  %s427_s23 = sshll.u32 %s2899_s14, 4  ;;  %s3103_s23 = int_to_ptr.vmem [resolvable:$true] %s427_s23 }
  0x3c   : > { %p3099_p3 = pnand %p2278_p0, %p412_p1  ;;  %s3580_s8 = sld [smem:[#allocation27_spill]] }
  0x3d   : > { %s3578_s29 = scalar_select %p3095_p2, 1, 0 }
  0x3e   : > { %s3579_s20 = scalar_select %p3099_p3, 1, 0 }
  0x3f   : > { %p2547_p4 = pneg %p3099_p3  ;;  %s501_s13 = scalar_lea.vmem [#allocation9], %s3034_s18 }
  0x40   : > { %s508_s7 = sshll.u32 %s501_s13, 4  ;;  %s3582_s0 = sld [smem:[#allocation22_spill]]  ;;  %s3120_s7 = int_to_ptr.vmem [resolvable:$true] %s508_s7 }
  0x41   : > { %p3115_p5 = pnand %p2547_p4, %p3553_p13 }
  0x42   : > { %s3111_s22 = scalar_lea.hbm %s3580_s8, %s3037_s19 }
  0x43   : > { %p2722_p9 = pneg %p3115_p5 }
  0x46   : > { %s2720_s11 = scalar_lea.hbm %s3582_s0, 256 }
  0x47   : > { %p2721_p7 = scmp.ne.s32.totalorder %s3582_s0, %s2720_s11  ;;  %p2727_p10 = scmp.lt.u32.totalorder %s2720_s11, %s3582_s0 }
  0x49   : > { %p2723_p11 = pnand %p2722_p9, %p2721_p7 }
  0x4b   : > { %p2724_p12 = pneg %p2723_p11 }
  0x4d   : > { %p2729_p0 = pnand %p2727_p10, %p2724_p12 }
  0x4f   : > { %2732 = shalt.err (!%p2729_p0)
}
  0x50   : > { %s2733_s13 = scalar_lea.vmem %s3103_s23, 256  ;;  %p2741_p2 = scmp.lt.s32.totalorder %s3103_s23, %s3103_s23 }
  0x51   : > { %p2734_p1 = scmp.ne.s32.totalorder %s3103_s23, %s2733_s13  ;;  %p2742_p3 = scmp.lt.s32.totalorder %s2733_s13, %s2733_s13 }
  0x53   : > { %p2736_p4 = pnand %p2734_p1, %p2722_p9  ;;  %p2743_p6 = por %p2742_p3, %p2741_p2 }
  0x55   : > { %p2737_p13 = pneg %p2736_p4 }
  0x57   : > { %p2744_p8 = pnand %p2743_p6, %p2737_p13 }
  0x59   : > { %2747 = shalt.err (!%p2744_p8)
}
  0x5a   : > { %s2900_s9 = smov 128   ;;  %s2901_s11 = smov 8  }
  0x5b   : > { %2550 = dma.hbm_to_vmem [thread:$0]  (!%p3115_p5), %s3582_s0, 256, %s3103_s23, [#allocation5], %s2900_s9, %s2900_s9, %s2901_s11  }
  0x5c   : > { %s2748_s14 = scalar_lea.hbm %s3111_s22, 16  ;;  %p3583_p9 = scmp.ne.s32.totalorder %s3577_s21, 0 }
  0x5d   : > { %p2749_p7 = scmp.ne.s32.totalorder %s3111_s22, %s2748_s14  ;;  %s2753_s13 = scalar_lea.hbm %s3580_s8, 32 }
  0x5e   : > { %p2754_p8 = scmp.lt.u32.totalorder %s3111_s22, %s3580_s8  ;;  %p2755_p13 = scmp.lt.u32.totalorder %s2753_s13, %s2748_s14 }
  0x5f   : > { %p2751_p2 = pnand %p2749_p7, %p3583_p9  ;;  %p2757_p11 = scmp.lt.u32.totalorder %s2748_s14, %s3111_s22 }
  0x60   : > { %p2756_p3 = por %p2755_p13, %p2754_p8 }
  0x61   : > { %p2752_p6 = pneg %p2751_p2 }
  0x62   : > { %p2758_p12 = por %p2757_p11, %p2756_p3 }
  0x64   : > { %p2759_p10 = pnand %p2758_p12, %p2752_p6 }
  0x66   : > { %2762 = shalt.err (!%p2759_p10)
}
  0x67   : > { %s2763_s23 = scalar_lea.vmem %s3120_s7, 16  ;;  %s2902_s24 = smov [#allocation9]  }
  0x68   : > { %p2764_p5 = scmp.ne.s32.totalorder %s3120_s7, %s2763_s23  ;;  %s2768_s9 = sshll.u32 %s2902_s24, 4  ;;  %s2769_s9 = int_to_ptr.vmem [resolvable:$false] %s2768_s9 }
  0x69   : > { %s2770_s5 = scalar_lea.vmem %s2769_s9, 32  ;;  %p2771_p4 = scmp.lt.s32.totalorder %s3120_s7, %s2769_s9 }
  0x6a   : > { %p2766_p0 = pnand %p2764_p5, %p3583_p9  ;;  %p2772_p7 = scmp.lt.s32.totalorder %s2770_s5, %s2763_s23 }
  0x6c   : > { %p2767_p1 = pneg %p2766_p0  ;;  %p2773_p2 = por %p2772_p7, %p2771_p4 }
  0x6e   : > { %p2774_p8 = pnand %p2773_p2, %p2767_p1 }
  0x70   : > { %2777 = shalt.err (!%p2774_p8)
}
  0x71   : > { %p3584_p6 = scmp.ne.s32.totalorder %s3576_s16, 0  ;;  %s3169_s12 = scalar_lea.hbm %s3544_s10, %s3037_s19 }
  0x72   : > { %s526_s30 = scalar_lea.vmem [#allocation10], %s3034_s18  ;;  %s524_s25 = scalar_lea.sflag [#allocation11], %s3034_s18 }
  0x73   : > { %2557 = dma.hbm_to_vmem [thread:$0]  (!%p3584_p6), %s3111_s22, 16, %s3120_s7, %s3055_s15  }
  0x74   : > { %s533_s14 = sshll.u32 %s526_s30, 4  ;;  %s2778_s17 = scalar_lea.hbm %s3169_s12, 16  ;;  %s534_s14 = int_to_ptr.vmem [resolvable:$true] %s533_s14 }
  0x75   : > { %p2779_p13 = scmp.ne.s32.totalorder %s3169_s12, %s2778_s17  ;;  %s2783_s15 = scalar_lea.hbm %s3544_s10, 32 }
  0x76   : > { %p2784_p12 = scmp.lt.u32.totalorder %s3169_s12, %s3544_s10  ;;  %p2785_p10 = scmp.lt.u32.totalorder %s2783_s15, %s2778_s17 }
  0x77   : > { %p2781_p3 = pnand %p2779_p13, %p3583_p9  ;;  %p2787_p0 = scmp.lt.u32.totalorder %s2778_s17, %s3169_s12 }
  0x78   : > { %p2786_p5 = por %p2785_p10, %p2784_p12 }
  0x79   : > { %p2782_p11 = pneg %p2781_p3 }
  0x7a   : > { %p2788_p1 = por %p2787_p0, %p2786_p5 }
  0x7c   : > { %p2789_p4 = pnand %p2788_p1, %p2782_p11 }
  0x7e   : > { %2792 = shalt.err (!%p2789_p4)
}
  0x7f   : > { %s2793_s18 = scalar_lea.vmem %s534_s14, 16  ;;  %s2903_s23 = smov [#allocation10]  }
  0x80   : > { %p2794_p7 = scmp.ne.s32.totalorder %s534_s14, %s2793_s18  ;;  %s2798_s24 = sshll.u32 %s2903_s23, 4  ;;  %s2799_s24 = int_to_ptr.vmem [resolvable:$false] %s2798_s24 }
  0x81   : > { %s2800_s9 = scalar_lea.vmem %s2799_s24, 32  ;;  %p2801_p13 = scmp.lt.s32.totalorder %s534_s14, %s2799_s24 }
  0x82   : > { %p2796_p2 = pnand %p2794_p7, %p3583_p9  ;;  %p2802_p3 = scmp.lt.s32.totalorder %s2800_s9, %s2793_s18 }
  0x84   : > { %p2797_p8 = pneg %p2796_p2  ;;  %p2803_p6 = por %p2802_p3, %p2801_p13 }
  0x86   : > { %p2804_p10 = pnand %p2803_p6, %p2797_p8 }
  0x88   : > { %2807 = shalt.err (!%p2804_p10)
}
  0x89   : > { %p3585_p12 = scmp.ne.s32.totalorder %s3576_s16, 0  ;;  %p3586_p11 = scmp.ne.s32.totalorder %s3579_s20, 0 }
  0x8a   : > { %p3587_p5 = scmp.eq.s32.totalorder (!%p3586_p11), %s3086_s27, 0 }
  0x8b   : > { %2560 = dma.hbm_to_vmem [thread:$0]  (!%p3585_p12), %s3169_s12, 16, %s534_s14, %s524_s25  }
  0x8c   : > { %556 = sbr.rel (%p3586_p11) target bundleno = 4340 (0x10f4), region = 72 }
  0x93   : > { %2859 = dma.done.wait (%p3587_p5), [#allocation5], 256   ;;  %p3588_p9 = pmov %p3587_p5 }
  0x94   : > { %s562_s21 = sand.u32 1, %s3086_s27   ;;  %s3198_s5 = sand.u32 1, %s2880_s26  }
  0x95   : > { %2861 = vsyncadd (%p3588_p9), [#allocation5], 4294967040  ;;  %s563_s6 = scalar_lea.sflag [#allocation8], %s562_s21  ;;  %p3589_p6 = scmp.ne.s32.totalorder %s3578_s29, 0 }
  0x97   : > { %2863 = dma.done.wait (%p3589_p6), %s563_s6, 32  }
  0x98   : > { %2865 = vsyncadd (%p3589_p6), %s563_s6, 4294967264  ;;  %s579_s11 = scalar_lea.sflag [#allocation11], %s3198_s5 }
  0x99   : > { %2867 = dma.done.wait (%p3589_p6), %s579_s11, 16  }
  0x9a   : > { %2869 = vsyncadd (%p3589_p6), %s579_s11, 4294967280  ;;  %p662_p0 = scmp.lt.s32.totalorder %s2888_s28, 1  ;;  %s3590_s3 = sld [smem:[#allocation23_spill]] }
  0x9b   : > { %s3591_s11 = sld [smem:[#allocation24_spill]]  ;;  %s3592_s20 = sld [smem:[#allocation25_spill]] }
  0x9c   : > { %s3214_s30 = scalar_select %p662_p0, %s2888_s28, 1 }
  0x9d   : > { %s3593_s29 = sld [smem:[#allocation28_spill]]  ;;  %s3594_s23 = sld [smem:[#allocation30_spill]] }
  0x9e   : > { %s2345_s15 = sshll.u32 %s3214_s30, 4  ;;  %s2348_s22 = sshll.u32 %s3214_s30, 5 }
  0x9f   : > { %s3595_s8 = sld [smem:[#allocation29_spill]]  ;;  %p2294_p1 = scmp.ne.s32.totalorder %s2888_s28, 0 }
  0xa0   : > { %s3232_s9 = scalar_lea.vmem %s3590_s3, %s2345_s15  ;;  %v703_v0 = vld [vmem:[#allocation4] sm:$0xff] (!%p2294_p1)  ;;  %vm705_vm0 = vcmask (!%p2294_p1), 261120   ;;  %v704_v1 = vld [vmem:[#allocation4 + $0x8] sm:$0xff] (!%p2294_p1) }
  0xa1   : > { %s3237_s14 = scalar_lea.vmem %s3591_s11, %s2345_s15  ;;  %s683_s13 = scalar_lea.vmem %s3592_s20, %s3214_s30  ;;  %706 = vst.msk [vmem:[#allocation2] sm:$0xff] (!%p2294_p1), %vm705_vm0, %v703_v0  ;;  %707 = vst.msk [vmem:[#allocation2 + $0x8] sm:$0xff] (!%p2294_p1), %vm705_vm0, %v704_v1 }
  0xa2   : > { %702 = sbr.rel (%p2294_p1) target bundleno = 169 (0xa9), region = 92 }
  0xa3   : > { %s3246_s17 = scalar_lea.vmem %s3593_s29, %s2345_s15  ;;  %s696_s24 = scalar_lea.vmem %s3594_s23, %s3214_s30 }
  0xa5   : > { %s3256_s21 = scalar_lea.vmem %s3595_s8, %s2348_s22 }
  0xa9 PF: > { %v3259_v2 = vld [vmem:[#allocation2] sm:$0xff]  ;;  %vm712_vm1 = vcmask 261120   ;;  %v3261_v3 = vld [vmem:[#allocation2 + $0x8] sm:$0xff]  ;;  %v2904_v17 = vmov 0.0   ;;  %vm2905_vm2 = vmmov 0   ;;  %s3596_s8 = scalar_lea.vmem %s3535_s1, %s3214_s30  ;;  %s3597_s12 = scalar_lea.vmem %s3536_s2, %s3214_s30  ;;  %vm829_vm3 = vcmask 64512  }
  0xaa   : > { %v713_v4 = vsel %vm712_vm1, %v3259_v2, 0.0  ;;  %v716_v5 = vsel %vm712_vm1, %v3261_v3, 0.0  ;;  %v2635_v16 = vld [vmem:[%s3232_s9] sm:$0xff]   ;;  %2401 = vmatprep.subr.bf16.mxu0 %v2904_v17  ;;  %2409 = vmatprep.subr.bf16.mxu1 %v2904_v17  ;;  %v2636_v18 = vld [vmem:[%s3232_s9 + $0x8] sm:$0xff]   ;;  %s3598_s18 = scalar_lea.vmem %s3538_s4, %s3214_s30  ;;  %s2906_s9 = smov 96   ;;  %vm954_vm4 = vcmask 1043456  }
  0xab   : > { %714 = vadd.xlane.f32.xlu0 %v713_v4  ;;  %2402 = vmatpush3.bf16.msra.mxu0 %v2635_v16  ;;  %v2295_v27 = vld [vmem:[%s3596_s8] ss:$0 sm:$0xff]  ;;  %s2907_s6 = smov 64   ;;  %s2908_s11 = smov 88   ;;  %vm1048_vm5 = vcmask 60416   ;;  %vm1285_vm6 = vcmask 126016  }
  0xac   : > { %2405 = vmatprep.mubr.msk.bf16.mxu0 %vm2905_vm2, %v2904_v17  ;;  %2403 = vmatprep.subr.bf16.mxu0 %v2904_v17  ;;  %v2296_v31 = vld [vmem:[%s3597_s12] ss:$0 sm:$0xff]  ;;  %s2909_s25 = smov 120   ;;  %s2910_s7 = smov 56   ;;  %vm1522_vm7 = vcmask 191616   ;;  %vm1759_vm8 = vcmask 257216  }
  0xad   : > { %2411 = vmatprep.mubr.msk.bf16.mxu1 %vm2905_vm2, %v2904_v17  ;;  %v2297_v36 = vld [vmem:[%s3598_s18] ss:$0 sm:$0xff]  ;;  %s2911_s22 = smov 80   ;;  %s2912_s19 = smov 112   ;;  %vm2008_vm9 = vcmask 523264  }
  0xae   : > { %s2913_s23 = smov 48   ;;  %s2914_s0 = smov 72  }
  0xaf   : > { %717 = vadd.xlane.f32.xlu0 %v716_v5  ;;  %2404 = vmatpush3.bf16.msra.mxu0 %v2636_v18  ;;  %s2915_s3 = smov 104   ;;  %s2916_s8 = smov 40  }
  0xb0   : > { %2415 = vmatprep.subr.bf16.mxu0 %v2904_v17  ;;  %s2917_s16 = smov 8   ;;  %s2918_s20 = smov 16  }
  0xb1   : > { %s2919_s12 = smov 24   ;;  %s3602_s18 = scalar_lea.vmem [#allocation10], %s3198_s5 }
  0xb2   : > { %p2340_p4 = scmp.ne.s32.totalorder %s2888_s28, 1 }
 0x138   : > { %v715_v6 = vpop.xlane.xlu0 %714 }
 0x139   : > { %v720_v7 = vmul.f32 0.03125, %v715_v6 }
 0x13b   : > { %v722_v8 = vsub.f32 %v3259_v2, %v720_v7 }
 0x13c   : > { %v718_v9 = vpop.xlane.xlu0 %717 }
 0x13d   : > { %v721_v10 = vmul.f32 0.03125, %v718_v9  ;;  %v724_v11 = vmul.f32 %v722_v8, %v722_v8 }
 0x13f   : > { %v723_v12 = vsub.f32 %v3261_v3, %v721_v10  ;;  %v726_v13 = vsel %vm712_vm1, %v724_v11, 0.0 }
 0x140   : > { %727 = vadd.xlane.f32.xlu1 %v726_v13 }
 0x141   : > { %v725_v14 = vmul.f32 %v723_v12, %v723_v12 }
 0x143   : > { %v729_v15 = vsel %vm712_vm1, %v725_v14, 0.0 }
 0x144   : > { %730 = vadd.xlane.f32.xlu1 %v729_v15 }
 0x1cd   : > { %v728_v19 = vpop.xlane.xlu1 %727 }
 0x1ce   : > { %v732_v20 = vmul.f32 0.03125, %v728_v19 }
 0x1d0   : > { %v734_v21 = vadd.f32 1e-06, %v732_v20 }
 0x1d1   : > { %v731_v22 = vpop.xlane.xlu1 %730 }
 0x1d2   : > { %2646 = vrsqrt.f32 %v734_v21  ;;  %v733_v23 = vmul.f32 0.03125, %v731_v22 }
 0x1d4   : > { %v735_v24 = vadd.f32 1e-06, %v733_v23 }
 0x1d6   : > { %2648 = vrsqrt.f32 %v735_v24 }
 0x1dc   : > { %v2647_v25 = vpop.eup %2646 }
 0x1dd   : > { %v738_v26 = vmul.f32 %v2647_v25, %v722_v8 }
 0x1df   : > { %v746_v30 = vmul.f32 %v2295_v27, %v738_v26 }
 0x1e0   : > { %v2649_v28 = vpop.eup %2648 }
 0x1e1   : > { %v739_v29 = vmul.f32 %v2649_v28, %v723_v12  ;;  %v754_v33 = vadd.f32 %v2296_v31, %v746_v30 }
 0x1e3   : > { %v747_v32 = vmul.f32 %v2295_v27, %v739_v29 }
 0x1e5   : > { %v755_v34 = vadd.f32 %v2296_v31, %v747_v32 }
 0x1e7   : > { %v756_v35 = vpack.c.bf16 %v755_v34, %v754_v33 }
 0x1e9   : > { %2406 = vmatmul.mubr.msk.bf16.vlgmr.msra.gmra.mrb[0].mxu0 %vm712_vm1, %v756_v35 }
 0x1ea   : > { %2417 = vmatprep.mubr.msk.bf16.mxu0 %vm2905_vm2, %v2904_v17 }
 0x2bc   : > { %v817_v37 = vpop.f32.mrb[0].mxu0 }
 0x2bd   : > { %v818_v38 = vadd.f32 %v2297_v36, %v817_v37  ;;  %v2407_v39 = vpop.f32.mrb[1].mxu0 }
 0x2be   : > { %v820_v40 = vpop.f32.mrb[2].mxu0 }
 0x2bf   : > { %v3299_v41 = vpack.c.bf16 %v818_v38, %v818_v38  ;;  %v821_v42 = vadd.f32 %v2297_v36, %v820_v40  ;;  %v2408_v43 = vpop.f32.mrb[3].mxu0 }
 0x2c1   : > { %v3301_v44 = vpack.c.bf16 %v821_v42, %v821_v42  ;;  %827 = vrot.lane.b32.xlu0 %v3299_v41, %s2906_s9 }
 0x2c3   : > { %877 = vrot.lane.b32.xlu1 %v3301_v44, %s2906_s9 }
 0x333   : > { %v828_v45 = vpop.permute.xlu0 %827 }
 0x334   : > { %v834_v46 = vsel %vm829_vm3, %v828_v45, 0 }
 0x335   : > { %2410 = vmatpush3.bf16.xpose.msra.mxu1 %v834_v46  ;;  %v878_v47 = vpop.permute.xlu1 %877 }
 0x336   : > { %v883_v48 = vsel %vm829_vm3, %v878_v47, 0  ;;  %2421 = vmatprep.subr.bf16.mxu1 %v2904_v17 }
 0x337   : > { %2416 = vmatpush3.bf16.xpose.msra.mxu0 %v883_v48 }
 0x338   : > { %2427 = vmatprep.subr.bf16.mxu0 %v2904_v17 }
 0x33c   : > { %2412 = vmatmul.mubr.msk.bf16.vlgmr.msra.gmra.mrb[0].mxu1 %vm829_vm3, %v3299_v41 }
 0x33d   : > { %2423 = vmatprep.mubr.msk.bf16.mxu1 %vm2905_vm2, %v2904_v17 }
 0x33e   : > { %2418 = vmatmul.mubr.msk.bf16.vlgmr.msra.gmra.mrb[4].mxu0 %vm829_vm3, %v3301_v44 }
 0x33f   : > { %2429 = vmatprep.mubr.msk.bf16.mxu0 %vm2905_vm2, %v2904_v17 }
 0x40f   : > { %v870_v49 = vpop.f32.mrb[0].mxu1 }
 0x410   : > { %v2413_v50 = vpop.f32.mrb[1].mxu1  ;;  %v925_v51 = vsel %vm829_vm3, %v870_v49, -inf }
 0x411   : > { %v873_v52 = vpop.f32.mrb[2].mxu1  ;;  %926 = vmax.xlane.f32.xlu1 %v925_v51  ;;  %v919_v53 = vpop.f32.mrb[4].mxu0 }
 0x412   : > { %v2414_v54 = vpop.f32.mrb[3].mxu1  ;;  %v2419_v55 = vpop.f32.mrb[5].mxu0  ;;  %v928_v56 = vsel %vm829_vm3, %v919_v53, -inf }
 0x413   : > { %929 = vmax.xlane.f32.xlu0 %v928_v56  ;;  %v922_v57 = vpop.f32.mrb[6].mxu0 }
 0x414   : > { %v2420_v58 = vpop.f32.mrb[7].mxu0 }
 0x422   : > { %998 = vrot.lane.b32.xlu1 %v3301_v44, %s2907_s6 }
 0x426   : > { %1053 = vrot.lane.b32.xlu1 %v3299_v41, %s2908_s11 }
 0x49e   : > { %v927_v59 = vpop.xlane.xlu1 %926 }
 0x49f   : > { %v931_v60 = vsub.f32 %v870_v49, %v927_v59 }
 0x4a0   : > { %v930_v61 = vpop.xlane.xlu0 %929 }
 0x4a1   : > { %v933_v62 = vmul.f32 1.442695, %v931_v60  ;;  %v932_v63 = vsub.f32 %v919_v53, %v930_v61 }
 0x4a2   : > { %v999_v0 = vpop.permute.xlu1 %998 }
 0x4a3   : > { %2650 = vpow2.f32 %v933_v62  ;;  %v935_v1 = vmul.f32 1.442695, %v932_v63  ;;  %v1004_v4 = vsel %vm954_vm4, %v999_v0, 0 }
 0x4a4   : > { %2428 = vmatpush3.bf16.msra.mxu0 %v1004_v4 }
 0x4a5   : > { %2652 = vpow2.f32 %v935_v1  ;;  %2439 = vmatprep.subr.bf16.mxu0 %v2904_v17 }
 0x4a6   : > { %v1054_v9 = vpop.permute.xlu1 %1053 }
 0x4a7   : > { %v1059_v21 = vsel %vm829_vm3, %v1054_v9, 0 }
 0x4ad   : > { %v2651_v5 = vpop.eup %2650 }
 0x4ae   : > { %v937_v6 = vsel %vm829_vm3, %v2651_v5, 0.0 }
 0x4af   : > { %v2653_v7 = vpop.eup %2652  ;;  %938 = vadd.xlane.f32.xlu0 %v937_v6 }
 0x4b0   : > { %v940_v8 = vsel %vm829_vm3, %v2653_v7, 0.0 }
 0x4b1   : > { %941 = vadd.xlane.f32.xlu1 %v940_v8 }
 0x4c2   : > { %1103 = vrot.lane.b32.xlu1 %v3301_v44, %s2908_s11 }
 0x4c5   : > { %949 = vrot.lane.b32.xlu0 %v3299_v41, %s2907_s6 }
 0x4c6   : > { %1101 = vrot.lane.b32.xlu1 %v3301_v44, %s2909_s25 }
 0x4c9   : > { %1051 = vrot.lane.b32.xlu0 %v3299_v41, %s2909_s25 }
 0x53c   : > { %v939_v10 = vpop.xlane.xlu0 %938 }
 0x53d   : > { %2654 = vrcp.f32 %v939_v10 }
 0x53e   : > { %v942_v11 = vpop.xlane.xlu1 %941 }
 0x53f   : > { %2656 = vrcp.f32 %v942_v11 }
 0x540   : > { %v950_v12 = vpop.permute.xlu0 %949 }
 0x541   : > { %v956_v13 = vsel %vm954_vm4, %v950_v12, 0 }
 0x542   : > { %2422 = vmatpush3.bf16.msra.mxu1 %v956_v13  ;;  %v1104_v20 = vpop.permute.xlu1 %1103 }
 0x543   : > { %2433 = vmatprep.subr.bf16.mxu1 %v2904_v17  ;;  %v1109_v23 = vsel %vm829_vm3, %v1104_v20, 0 }
 0x544   : > { %v1052_v24 = vpop.permute.xlu0 %1051 }
 0x546   : > { %v1102_v25 = vpop.permute.xlu1 %1101 }
 0x547   : > { %v2655_v14 = vpop.eup %2654 }
 0x548   : > { %v945_v15 = vmul.f32 %v2655_v14, %v2651_v5 }
 0x549   : > { %v2657_v16 = vpop.eup %2656 }
 0x54a   : > { %v946_v18 = vmul.f32 %v2657_v16, %v2653_v7  ;;  %v947_v19 = vpack.c.bf16 %v945_v15, %v945_v15 }
 0x54c   : > { %2424 = vmatmul.mubr.msk.bf16.vlgmr.msra.gmra.mrb[4].mxu1 %vm829_vm3, %v947_v19  ;;  %v948_v22 = vpack.c.bf16 %v946_v18, %v946_v18 }
 0x54d   : > { %2434 = vmatpush3.bf16.xpose.msra.mxu1 %v1059_v21  ;;  %2435 = vmatprep.mubr.msk.bf16.mxu1 %vm2905_vm2, %v2904_v17 }
 0x54e   : > { %2430 = vmatmul.mubr.msk.bf16.vlgmr.msra.gmra.mrb[8].mxu0 %vm829_vm3, %v948_v22  ;;  %2445 = vmatprep.subr.bf16.mxu1 %v2904_v17 }
 0x54f   : > { %2440 = vmatpush3.bf16.xpose.msra.mxu0 %v1109_v23  ;;  %2441 = vmatprep.mubr.msk.bf16.mxu0 %vm2905_vm2, %v2904_v17 }
 0x550   : > { %2451 = vmatprep.subr.bf16.mxu0 %v2904_v17 }
 0x554   : > { %2436 = vmatmul.mubr.msk.bf16.vlgmr.msra.gmra.mrb[8].mxu1 %vm829_vm3, %v1052_v24 }
 0x555   : > { %2447 = vmatprep.mubr.msk.bf16.mxu1 %vm2905_vm2, %v2904_v17 }
 0x556   : > { %2442 = vmatmul.mubr.msk.bf16.vlgmr.msra.gmra.mrb[12].mxu0 %vm829_vm3, %v1102_v25 }
 0x557   : > { %2453 = vmatprep.mubr.msk.bf16.mxu0 %vm2905_vm2, %v2904_v17 }
 0x61f   : > { %v992_v26 = vpop.f32.mrb[4].mxu1 }
 0x620   : > { %v1046_v27 = vpack.c.bf16 %v992_v26, %v992_v26  ;;  %v2425_v28 = vpop.f32.mrb[5].mxu1 }
 0x621   : > { %v995_v29 = vpop.f32.mrb[6].mxu1  ;;  %v1040_v30 = vpop.f32.mrb[8].mxu0 }
 0x622   : > { %1049 = vst.msk [vmem:[#allocation3] sm:$0xf] %vm1048_vm5, %v1046_v27  ;;  %v1047_v31 = vpack.c.bf16 %v1040_v30, %v1040_v30  ;;  %v2426_v32 = vpop.f32.mrb[7].mxu1  ;;  %v2431_v33 = vpop.f32.mrb[9].mxu0 }
 0x623   : > { %v1043_v34 = vpop.f32.mrb[10].mxu0 }
 0x624   : > { %1050 = vst.msk [vmem:[#allocation3 + $0x4] sm:$0xf] %vm1048_vm5, %v1047_v31  ;;  %v2432_v35 = vpop.f32.mrb[11].mxu0 }
 0x627   : > { %v1095_v36 = vpop.f32.mrb[8].mxu1 }
 0x628   : > { %v2437_v37 = vpop.f32.mrb[9].mxu1  ;;  %v1151_v38 = vsel %vm829_vm3, %v1095_v36, -inf }
 0x629   : > { %1152 = vmax.xlane.f32.xlu0 %v1151_v38  ;;  %v1098_v39 = vpop.f32.mrb[10].mxu1  ;;  %v1145_v40 = vpop.f32.mrb[12].mxu0 }
 0x62a   : > { %v2438_v42 = vpop.f32.mrb[11].mxu1  ;;  %v2443_v43 = vpop.f32.mrb[13].mxu0  ;;  %v1154_v45 = vsel %vm829_vm3, %v1145_v40, -inf }
 0x62b   : > { %1155 = vmax.xlane.f32.xlu1 %v1154_v45  ;;  %v1148_v46 = vpop.f32.mrb[14].mxu0 }
 0x62c   : > { %v2444_v47 = vpop.f32.mrb[15].mxu0 }
 0x63c   : > { %1223 = vrot.lane.b32.xlu1 %v3301_v44, %s2910_s7 }
 0x640   : > { %1290 = vrot.lane.b32.xlu1 %v3299_v41, %s2911_s22 }
 0x644   : > { %1340 = vrot.lane.b32.xlu1 %v3301_v44, %s2911_s22 }
 0x648   : > { %1338 = vrot.lane.b32.xlu1 %v3301_v44, %s2912_s19 }
 0x6b6   : > { %v1153_v48 = vpop.xlane.xlu0 %1152 }
 0x6b7   : > { %v1157_v49 = vsub.f32 %v1095_v36, %v1153_v48 }
 0x6b8   : > { %v1156_v50 = vpop.xlane.xlu1 %1155 }
 0x6b9   : > { %v1159_v51 = vmul.f32 1.442695, %v1157_v49  ;;  %v1158_v52 = vsub.f32 %v1145_v40, %v1156_v50 }
 0x6bb   : > { %2658 = vpow2.f32 %v1159_v51  ;;  %v1161_v53 = vmul.f32 1.442695, %v1158_v52 }
 0x6bc   : > { %v1224_v54 = vpop.permute.xlu1 %1223 }
 0x6bd   : > { %2660 = vpow2.f32 %v1161_v53  ;;  %v1229_v55 = vsel %vm954_vm4, %v1224_v54, 0 }
 0x6be   : > { %2452 = vmatpush3.bf16.msra.mxu0 %v1229_v55 }
 0x6bf   : > { %2463 = vmatprep.subr.bf16.mxu0 %v2904_v17 }
 0x6c0   : > { %v1291_v1 = vpop.permute.xlu1 %1290 }
 0x6c1   : > { %v1296_v9 = vsel %vm829_vm3, %v1291_v1, 0 }
 0x6c4   : > { %v1341_v8 = vpop.permute.xlu1 %1340 }
 0x6c5   : > { %v2659_v56 = vpop.eup %2658  ;;  %v1346_v11 = vsel %vm829_vm3, %v1341_v8, 0 }
 0x6c6   : > { %v1163_v57 = vsel %vm829_vm3, %v2659_v56, 0.0 }
 0x6c7   : > { %v2661_v58 = vpop.eup %2660  ;;  %1164 = vadd.xlane.f32.xlu0 %v1163_v57 }
 0x6c8   : > { %v1166_v59 = vsel %vm829_vm3, %v2661_v58, 0.0  ;;  %v1339_v13 = vpop.permute.xlu1 %1338 }
 0x6cb   : > { %1167 = vadd.xlane.f32.xlu0 %v1166_v59 }
 0x6e1   : > { %1175 = vrot.lane.b32.xlu0 %v3299_v41, %s2910_s7 }
 0x6e5   : > { %1288 = vrot.lane.b32.xlu0 %v3299_v41, %s2912_s19 }
 0x754   : > { %v1165_v60 = vpop.xlane.xlu0 %1164 }
 0x755   : > { %2662 = vrcp.f32 %v1165_v60 }
 0x758   : > { %v1168_v61 = vpop.xlane.xlu0 %1167 }
 0x759   : > { %2664 = vrcp.f32 %v1168_v61 }
 0x75c   : > { %v1176_v62 = vpop.permute.xlu0 %1175 }
 0x75d   : > { %v1181_v63 = vsel %vm954_vm4, %v1176_v62, 0 }
 0x75e   : > { %2446 = vmatpush3.bf16.msra.mxu1 %v1181_v63 }
 0x75f   : > { %v2663_v0 = vpop.eup %2662  ;;  %2457 = vmatprep.subr.bf16.mxu1 %v2904_v17 }
 0x760   : > { %v1171_v4 = vmul.f32 %v2663_v0, %v2659_v56  ;;  %v1289_v12 = vpop.permute.xlu0 %1288 }
 0x762   : > { %v1173_v5 = vpack.c.bf16 %v1171_v4, %v1171_v4 }
 0x763   : > { %v2665_v6 = vpop.eup %2664 }
 0x764   : > { %v1172_v7 = vmul.f32 %v2665_v6, %v2661_v58  ;;  %2448 = vmatmul.mubr.msk.bf16.vlgmr.msra.gmra.mrb[12].mxu1 %vm829_vm3, %v1173_v5 }
 0x765   : > { %2459 = vmatprep.mubr.msk.bf16.mxu1 %vm2905_vm2, %v2904_v17 }
 0x766   : > { %v1174_v10 = vpack.c.bf16 %v1172_v7, %v1172_v7 }
 0x767   : > { %2458 = vmatpush3.bf16.xpose.msra.mxu1 %v1296_v9 }
 0x768   : > { %2454 = vmatmul.mubr.msk.bf16.vlgmr.msra.gmra.mrb[16].mxu0 %vm829_vm3, %v1174_v10  ;;  %2469 = vmatprep.subr.bf16.mxu1 %v2904_v17 }
 0x769   : > { %2464 = vmatpush3.bf16.xpose.msra.mxu0 %v1346_v11  ;;  %2465 = vmatprep.mubr.msk.bf16.mxu0 %vm2905_vm2, %v2904_v17 }
 0x76a   : > { %2475 = vmatprep.subr.bf16.mxu0 %v2904_v17 }
 0x76e   : > { %2460 = vmatmul.mubr.msk.bf16.vlgmr.msra.gmra.mrb[16].mxu1 %vm829_vm3, %v1289_v12 }
 0x76f   : > { %2471 = vmatprep.mubr.msk.bf16.mxu1 %vm2905_vm2, %v2904_v17 }
 0x770   : > { %2466 = vmatmul.mubr.msk.bf16.vlgmr.msra.gmra.mrb[20].mxu0 %vm829_vm3, %v1339_v13 }
 0x771   : > { %2477 = vmatprep.mubr.msk.bf16.mxu0 %vm2905_vm2, %v2904_v17 }
 0x837   : > { %v3377_v14 = vpop.f32.mrb[12].mxu1 }
 0x838   : > { %v2449_v15 = vpop.f32.mrb[13].mxu1 }
 0x839   : > { %v1220_v16 = vpop.f32.mrb[14].mxu1 }
 0x83a   : > { %v2450_v18 = vpop.f32.mrb[15].mxu1 }
 0x83b   : > { %v3379_v19 = vpop.f32.mrb[16].mxu0 }
 0x83c   : > { %v2455_v20 = vpop.f32.mrb[17].mxu0 }
 0x83d   : > { %v1268_v21 = vpop.f32.mrb[18].mxu0 }
 0x83e   : > { %v2456_v22 = vpop.f32.mrb[19].mxu0 }
 0x83f   : > { %v2349_v22 = vpack.c.bf16 %v3377_v14, %v3377_v14 }
 0x841   : > { %v1332_v23 = vpop.f32.mrb[16].mxu1 }
 0x842   : > { %v2461_v24 = vpop.f32.mrb[17].mxu1  ;;  %v1388_v25 = vsel %vm829_vm3, %v1332_v23, -inf }
 0x843   : > { %1389 = vmax.xlane.f32.xlu0 %v1388_v25  ;;  %v1335_v26 = vpop.f32.mrb[18].mxu1  ;;  %v1382_v27 = vpop.f32.mrb[20].mxu0 }
 0x844   : > { %v2462_v28 = vpop.f32.mrb[19].mxu1  ;;  %v2467_v29 = vpop.f32.mrb[21].mxu0  ;;  %v1391_v30 = vsel %vm829_vm3, %v1382_v27, -inf }
 0x845   : > { %1392 = vmax.xlane.f32.xlu1 %v1391_v30  ;;  %v1385_v31 = vpop.f32.mrb[22].mxu0 }
 0x846   : > { %v2468_v32 = vpop.f32.mrb[23].mxu0 }
 0x856   : > { %1460 = vrot.lane.b32.xlu1 %v3301_v44, %s2913_s23 }
 0x85a   : > { %1527 = vrot.lane.b32.xlu1 %v3299_v41, %s2914_s0 }
 0x85e   : > { %1577 = vrot.lane.b32.xlu1 %v3301_v44, %s2914_s0 }
 0x862   : > { %1575 = vrot.lane.b32.xlu1 %v3301_v44, %s2915_s3 }
 0x8d0   : > { %v1390_v33 = vpop.xlane.xlu0 %1389 }
 0x8d1   : > { %v1394_v34 = vsub.f32 %v1332_v23, %v1390_v33  ;;  %v2350_v23 = vpack.c.bf16 %v3379_v19, %v3379_v19 }
 0x8d2   : > { %v1393_v35 = vpop.xlane.xlu1 %1392 }
 0x8d3   : > { %v1396_v36 = vmul.f32 1.442695, %v1394_v34  ;;  %v1395_v37 = vsub.f32 %v1382_v27, %v1393_v35 }
 0x8d5   : > { %2666 = vpow2.f32 %v1396_v36  ;;  %v1398_v38 = vmul.f32 1.442695, %v1395_v37 }
 0x8d6   : > { %v1461_v39 = vpop.permute.xlu1 %1460 }
 0x8d7   : > { %2668 = vpow2.f32 %v1398_v38  ;;  %v1466_v40 = vsel %vm954_vm4, %v1461_v39, 0 }
 0x8d8   : > { %2476 = vmatpush3.bf16.msra.mxu0 %v1466_v40 }
 0x8d9   : > { %2487 = vmatprep.subr.bf16.mxu0 %v2904_v17 }
 0x8da   : > { %v1528_v52 = vpop.permute.xlu1 %1527 }
 0x8db   : > { %v1533_v58 = vsel %vm829_vm3, %v1528_v52, 0 }
 0x8de   : > { %v1578_v57 = vpop.permute.xlu1 %1577 }
 0x8df   : > { %v2667_v42 = vpop.eup %2666  ;;  %v1583_v60 = vsel %vm829_vm3, %v1578_v57, 0 }
 0x8e0   : > { %v1400_v43 = vsel %vm829_vm3, %v2667_v42, 0.0 }
 0x8e1   : > { %v2669_v45 = vpop.eup %2668  ;;  %1401 = vadd.xlane.f32.xlu0 %v1400_v43 }
 0x8e2   : > { %v1403_v46 = vsel %vm829_vm3, %v2669_v45, 0.0  ;;  %v1576_v62 = vpop.permute.xlu1 %1575 }
 0x8e5   : > { %1404 = vadd.xlane.f32.xlu0 %v1403_v46 }
 0x8fb   : > { %1412 = vrot.lane.b32.xlu0 %v3299_v41, %s2913_s23 }
 0x8ff   : > { %1525 = vrot.lane.b32.xlu0 %v3299_v41, %s2915_s3 }
 0x96e   : > { %v1402_v47 = vpop.xlane.xlu0 %1401 }
 0x96f   : > { %2670 = vrcp.f32 %v1402_v47 }
 0x972   : > { %v1405_v48 = vpop.xlane.xlu0 %1404 }
 0x973   : > { %2672 = vrcp.f32 %v1405_v48 }
 0x976   : > { %v1413_v49 = vpop.permute.xlu0 %1412 }
 0x977   : > { %v1418_v50 = vsel %vm954_vm4, %v1413_v49, 0 }
 0x978   : > { %2470 = vmatpush3.bf16.msra.mxu1 %v1418_v50  ;;  %v2637_v50 = vld [vmem:[%s3237_s14] sm:$0xff]  }
 0x979   : > { %v2671_v51 = vpop.eup %2670  ;;  %2481 = vmatprep.subr.bf16.mxu1 %v2904_v17 }
 0x97a   : > { %v1408_v53 = vmul.f32 %v2671_v51, %v2667_v42  ;;  %v1526_v61 = vpop.permute.xlu0 %1525  ;;  %v2638_v51 = vld [vmem:[%s3237_s14 + $0x8] sm:$0xff]  }
 0x97c   : > { %v1410_v54 = vpack.c.bf16 %v1408_v53, %v1408_v53 }
 0x97d   : > { %v2673_v55 = vpop.eup %2672 }
 0x97e   : > { %v1409_v56 = vmul.f32 %v2673_v55, %v2669_v45  ;;  %2472 = vmatmul.mubr.msk.bf16.vlgmr.msra.gmra.mrb[20].mxu1 %vm829_vm3, %v1410_v54 }
 0x97f   : > { %2483 = vmatprep.mubr.msk.bf16.mxu1 %vm2905_vm2, %v2904_v17 }
 0x980   : > { %v1411_v59 = vpack.c.bf16 %v1409_v56, %v1409_v56 }
 0x981   : > { %2482 = vmatpush3.bf16.xpose.msra.mxu1 %v1533_v58 }
 0x982   : > { %2478 = vmatmul.mubr.msk.bf16.vlgmr.msra.gmra.mrb[24].mxu0 %vm829_vm3, %v1411_v59  ;;  %2493 = vmatprep.subr.bf16.mxu1 %v2904_v17 }
 0x983   : > { %2488 = vmatpush3.bf16.xpose.msra.mxu0 %v1583_v60  ;;  %2489 = vmatprep.mubr.msk.bf16.mxu0 %vm2905_vm2, %v2904_v17 }
 0x984   : > { %2499 = vmatprep.subr.bf16.mxu0 %v2904_v17 }
 0x988   : > { %2484 = vmatmul.mubr.msk.bf16.vlgmr.msra.gmra.mrb[24].mxu1 %vm829_vm3, %v1526_v61 }
 0x989   : > { %2495 = vmatprep.mubr.msk.bf16.mxu1 %vm2905_vm2, %v2904_v17 }
 0x98a   : > { %2490 = vmatmul.mubr.msk.bf16.vlgmr.msra.gmra.mrb[28].mxu0 %vm829_vm3, %v1576_v62 }
 0x98b   : > { %2501 = vmatprep.mubr.msk.bf16.mxu0 %vm2905_vm2, %v2904_v17 }
 0xa51   : > { %v1454_v63 = vpop.f32.mrb[20].mxu1 }
 0xa52   : > { %v2473_v0 = vpop.f32.mrb[21].mxu1  ;;  %v2351_v37 = vpack.c.bf16 %v1454_v63, %v1454_v63 }
 0xa53   : > { %v1457_v1 = vpop.f32.mrb[22].mxu1 }
 0xa54   : > { %v2474_v4 = vpop.f32.mrb[23].mxu1  ;;  %v2323_v1 = vld [vmem:[%s683_s13] ss:$0 sm:$0xff]  ;;  %s3600_s13 = scalar_lea.vmem [#allocation7], %s3198_s5 }
 0xa55   : > { %v1502_v5 = vpop.f32.mrb[24].mxu0 }
 0xa56   : > { %v2479_v6 = vpop.f32.mrb[25].mxu0  ;;  %v2352_v24 = vpack.c.bf16 %v1502_v5, %v1502_v5 }
 0xa57   : > { %v1505_v7 = vpop.f32.mrb[26].mxu0 }
 0xa58   : > { %v2480_v8 = vpop.f32.mrb[27].mxu0 }
 0xa5b   : > { %v1569_v9 = vpop.f32.mrb[24].mxu1 }
 0xa5c   : > { %v2485_v10 = vpop.f32.mrb[25].mxu1  ;;  %v1625_v11 = vsel %vm829_vm3, %v1569_v9, -inf }
 0xa5d   : > { %1626 = vmax.xlane.f32.xlu0 %v1625_v11  ;;  %v1572_v12 = vpop.f32.mrb[26].mxu1  ;;  %v1619_v13 = vpop.f32.mrb[28].mxu0 }
 0xa5e   : > { %v2486_v15 = vpop.f32.mrb[27].mxu1  ;;  %v2491_v16 = vpop.f32.mrb[29].mxu0  ;;  %v1628_v18 = vsel %vm829_vm3, %v1619_v13, -inf }
 0xa5f   : > { %1629 = vmax.xlane.f32.xlu1 %v1628_v18  ;;  %v1622_v20 = vpop.f32.mrb[30].mxu0 }
 0xa60   : > { %v2492_v21 = vpop.f32.mrb[31].mxu0 }
 0xa70   : > { %1697 = vrot.lane.b32.xlu1 %v3301_v44, %s2916_s8 }
 0xa74   : > { %1279 = vrot.lane.b32.xlu1 %v2349_v22, %s2917_s16 }
 0xa78   : > { %1281 = vrot.lane.b32.xlu1 %v2350_v23, %s2917_s16 }
 0xa7c   : > { %1518 = vrot.lane.b32.xlu1 %v2352_v24, %s2918_s20 }
 0xaea   : > { %v1627_v25 = vpop.xlane.xlu0 %1626 }
 0xaeb   : > { %v1631_v26 = vsub.f32 %v1569_v9, %v1627_v25  ;;  %v2640_v25 = vld [vmem:[%s3246_s17] sm:$0xff]  }
 0xaec   : > { %v1630_v27 = vpop.xlane.xlu1 %1629 }
 0xaed   : > { %v1633_v28 = vmul.f32 1.442695, %v1631_v26  ;;  %v1632_v29 = vsub.f32 %v1619_v13, %v1630_v27  ;;  %v2641_v26 = vld [vmem:[%s3246_s17 + $0x8] sm:$0xff]   ;;  %s3601_s17 = scalar_lea.vmem [#allocation9], %s3198_s5 }
 0xaef   : > { %2674 = vpow2.f32 %v1633_v28  ;;  %v1635_v44 = vmul.f32 1.442695, %v1632_v29 }
 0xaf0   : > { %v1698_v30 = vpop.permute.xlu1 %1697 }
 0xaf1   : > { %2676 = vpow2.f32 %v1635_v44  ;;  %v1703_v14 = vsel %vm954_vm4, %v1698_v30, 0 }
 0xaf2   : > { %2500 = vmatpush3.bf16.msra.mxu0 %v1703_v14 }
 0xaf3   : > { %2513 = vmatprep.subr.bf16.mxu0 %v2904_v17 }
 0xaf4   : > { %v1280_v19 = vpop.permute.xlu1 %1279 }
 0xaf5   : > { %1286 = vst.msk [vmem:[#allocation3] sm:$0xf] %vm1285_vm6, %v1280_v19 }
 0xaf8   : > { %v1282_v31 = vpop.permute.xlu1 %1281 }
 0xaf9   : > { %v2675_v32 = vpop.eup %2674  ;;  %1287 = vst.msk [vmem:[#allocation3 + $0x4] sm:$0xf] %vm1285_vm6, %v1282_v31 }
 0xafa   : > { %v1637_v33 = vsel %vm829_vm3, %v2675_v32, 0.0 }
 0xafb   : > { %v2677_v34 = vpop.eup %2676  ;;  %1638 = vadd.xlane.f32.xlu0 %v1637_v33 }
 0xafc   : > { %v1519_v35 = vpop.permute.xlu1 %1518  ;;  %v1640_v36 = vsel %vm829_vm3, %v2677_v34, 0.0 }
 0xafd   : > { %1524 = vst.msk [vmem:[#allocation3 + $0x4] sm:$0xf] %vm1522_vm7, %v1519_v35 }
 0xaff   : > { %1641 = vadd.xlane.f32.xlu0 %v1640_v36  ;;  %v2329_v36 = vld [vmem:[%s3601_s17] ss:$0 sm:$0xff] }
 0xb15   : > { %1649 = vrot.lane.b32.xlu0 %v3299_v41, %s2916_s8 }
 0xb19   : > { %1516 = vrot.lane.b32.xlu0 %v2351_v37, %s2918_s20 }
 0xb88   : > { %v1639_v38 = vpop.xlane.xlu0 %1638 }
 0xb89   : > { %2678 = vrcp.f32 %v1639_v38 }
 0xb8c   : > { %v1642_v39 = vpop.xlane.xlu0 %1641 }
 0xb8d   : > { %2680 = vrcp.f32 %v1642_v39 }
 0xb90   : > { %v1650_v40 = vpop.permute.xlu0 %1649 }
 0xb91   : > { %v1655_v42 = vsel %vm954_vm4, %v1650_v40, 0 }
 0xb92   : > { %2494 = vmatpush3.bf16.msra.mxu1 %v1655_v42  ;;  %v2642_v42 = vld [vmem:[%s3256_s21] sm:$0xff]  }
 0xb93   : > { %v2679_v43 = vpop.eup %2678  ;;  %2505 = vmatprep.subr.bf16.mxu1 %v2904_v17 }
 0xb94   : > { %v1645_v45 = vmul.f32 %v2679_v43, %v2675_v32  ;;  %v1517_v46 = vpop.permute.xlu0 %1516  ;;  %v2328_v32 = vld [vmem:[%s3600_s13] ss:$0 sm:$0xff]  ;;  %v2643_v43 = vld [vmem:[%s3256_s21 + $0x8] sm:$0xff]  }
 0xb95   : > { %1523 = vst.msk [vmem:[#allocation3] sm:$0xf] %vm1522_vm7, %v1517_v46  ;;  %v2645_v46 = vld [vmem:[%s3256_s21 + $0x18] sm:$0xff]  }
 0xb96   : > { %v1647_v41 = vpack.c.bf16 %v1645_v45, %v1645_v45  ;;  %v2644_v45 = vld [vmem:[%s3256_s21 + $0x10] sm:$0xff]  }
 0xb97   : > { %v2681_v47 = vpop.eup %2680 }
 0xb98   : > { %v1646_v48 = vmul.f32 %v2681_v47, %v2677_v34  ;;  %2496 = vmatmul.mubr.msk.bf16.vlgmr.msra.gmra.mrb[28].mxu1 %vm829_vm3, %v1647_v41  ;;  %v2330_v41 = vld [vmem:[%s3602_s18] ss:$0 sm:$0xff] }
 0xb99   : > { %2509 = vmatprep.mubr.msk.bf16.mxu1 %vm2905_vm2, %v2904_v17  ;;  %2506 = vmatpush3.bf16.msra.mxu1 %v2637_v50 }
 0xb9a   : > { %v1648_v49 = vpack.c.bf16 %v1646_v48, %v1646_v48  ;;  %2507 = vmatprep.subr.bf16.mxu1 %v2904_v17 }
 0xb9c   : > { %2502 = vmatmul.mubr.msk.bf16.vlgmr.msra.gmra.mrb[32].mxu0 %vm829_vm3, %v1648_v49 }
 0xb9d   : > { %2517 = vmatprep.mubr.msk.bf16.mxu0 %vm2905_vm2, %v2904_v17  ;;  %2508 = vmatpush3.bf16.msra.mxu1 %v2638_v51 }
 0xb9e   : > { %2521 = vmatprep.subr.bf16.mxu1 %v2904_v17  ;;  %2514 = vmatpush3.bf16.msra.mxu0 %v2640_v25 }
 0xb9f   : > { %2515 = vmatprep.subr.bf16.mxu0 %v2904_v17 }
 0xba2   : > { %2516 = vmatpush3.bf16.msra.mxu0 %v2641_v26 }
 0xc6b   : > { %v1691_v52 = vpop.f32.mrb[28].mxu1 }
 0xc6c   : > { %v2353_v53 = vpack.c.bf16 %v1691_v52, %v1691_v52  ;;  %v2497_v54 = vpop.f32.mrb[29].mxu1 }
 0xc6d   : > { %v1694_v55 = vpop.f32.mrb[30].mxu1 }
 0xc6e   : > { %1753 = vrot.lane.b32.xlu0 %v2353_v53, %s2919_s12  ;;  %v2498_v56 = vpop.f32.mrb[31].mxu1 }
 0xc6f   : > { %v1739_v57 = vpop.f32.mrb[32].mxu0 }
 0xc70   : > { %v2354_v58 = vpack.c.bf16 %v1739_v57, %v1739_v57  ;;  %v2503_v59 = vpop.f32.mrb[33].mxu0 }
 0xc71   : > { %v1742_v60 = vpop.f32.mrb[34].mxu0 }
 0xc72   : > { %1755 = vrot.lane.b32.xlu1 %v2354_v58, %s2919_s12  ;;  %v2504_v61 = vpop.f32.mrb[35].mxu0 }
 0xce0   : > { %v1754_v62 = vpop.permute.xlu0 %1753 }
 0xce1   : > { %1760 = vst.msk [vmem:[#allocation3] sm:$0xf] %vm1759_vm8, %v1754_v62 }
 0xce4   : > { %v1756_v63 = vpop.permute.xlu1 %1755 }
 0xce5   : > { %1761 = vst.msk [vmem:[#allocation3 + $0x4] sm:$0xf] %vm1759_vm8, %v1756_v63 }
 0xcec   : > { %v2639_v0 = vld [vmem:[#allocation3] sm:$0xff]  }
 0xced   : > { %2510 = vmatmul.mubr.msk.bf16.vlgmr.msra.gmra.mrb[32].mxu1 %vm712_vm1, %v2639_v0 }
 0xcee   : > { %2529 = vmatprep.mubr.msk.bf16.mxu1 %vm2905_vm2, %v2904_v17  ;;  %2522 = vmatpush3.bf16.msra.mxu1 %v2642_v42 }
 0xcef   : > { %2523 = vmatprep.subr.bf16.mxu1 %v2904_v17 }
 0xcf2   : > { %2524 = vmatpush3.bf16.msra.mxu1 %v2643_v43 }
 0xcf3   : > { %2525 = vmatprep.subr.bf16.mxu1 %v2904_v17 }
 0xcf6   : > { %2526 = vmatpush3.bf16.msra.mxu1 %v2644_v45 }
 0xcf7   : > { %2527 = vmatprep.subr.bf16.mxu1 %v2904_v17 }
 0xcfa   : > { %2528 = vmatpush3.bf16.msra.mxu1 %v2645_v46 }
 0xdc0   : > { %v1829_v4 = vpop.f32.mrb[32].mxu1 }
 0xdc1   : > { %v1830_v5 = vadd.f32 %v2323_v1, %v1829_v4  ;;  %v2511_v6 = vpop.f32.mrb[33].mxu1 }
 0xdc2   : > { %v1832_v7 = vpop.f32.mrb[34].mxu1 }
 0xdc3   : > { %v3450_v8 = vadd.f32 %v1830_v5, %v3259_v2  ;;  %v1833_v9 = vadd.f32 %v2323_v1, %v1832_v7  ;;  %v2512_v10 = vpop.f32.mrb[35].mxu1 }
 0xdc4   : > { %v2334_v10 = vld [vmem:[%s696_s24] ss:$0 sm:$0xff] }
 0xdc5   : > { %v3453_v11 = vadd.f32 %v1833_v9, %v3261_v3  ;;  %v1840_v12 = vsel %vm712_vm1, %v3450_v8, 0.0 }
 0xdc6   : > { %1841 = vadd.xlane.f32.xlu0 %v1840_v12 }
 0xdc7   : > { %v1843_v13 = vsel %vm712_vm1, %v3453_v11, 0.0 }
 0xdc8   : > { %1844 = vadd.xlane.f32.xlu1 %v1843_v13 }
 0xe53   : > { %v1842_v15 = vpop.xlane.xlu0 %1841 }
 0xe54   : > { %v1846_v16 = vmul.f32 0.03125, %v1842_v15 }
 0xe55   : > { %v1845_v18 = vpop.xlane.xlu1 %1844 }
 0xe56   : > { %v1848_v2 = vsub.f32 %v3450_v8, %v1846_v16  ;;  %v1847_v20 = vmul.f32 0.03125, %v1845_v18 }
 0xe58   : > { %v1849_v21 = vsub.f32 %v3453_v11, %v1847_v20  ;;  %v1850_v3 = vmul.f32 %v1848_v2, %v1848_v2 }
 0xe5a   : > { %v1852_v22 = vsel %vm712_vm1, %v1850_v3, 0.0  ;;  %v1851_v23 = vmul.f32 %v1849_v21, %v1849_v21 }
 0xe5b   : > { %1853 = vadd.xlane.f32.xlu0 %v1852_v22 }
 0xe5c   : > { %v1855_v24 = vsel %vm712_vm1, %v1851_v23, 0.0 }
 0xe5f   : > { %1856 = vadd.xlane.f32.xlu0 %v1855_v24 }
 0xee8   : > { %v1854_v27 = vpop.xlane.xlu0 %1853 }
 0xee9   : > { %v1858_v28 = vmul.f32 0.03125, %v1854_v27 }
 0xeeb   : > { %v1860_v29 = vadd.f32 1e-06, %v1858_v28 }
 0xeec   : > { %v1857_v44 = vpop.xlane.xlu0 %1856 }
 0xeed   : > { %2682 = vrsqrt.f32 %v1860_v29  ;;  %v1859_v30 = vmul.f32 0.03125, %v1857_v44 }
 0xeef   : > { %v1861_v14 = vadd.f32 1e-06, %v1859_v30 }
 0xef1   : > { %2684 = vrsqrt.f32 %v1861_v14 }
 0xef7   : > { %v2683_v19 = vpop.eup %2682 }
 0xef8   : > { %v1864_v31 = vmul.f32 %v2683_v19, %v1848_v2 }
 0xefa   : > { %v1872_v34 = vmul.f32 %v2328_v32, %v1864_v31 }
 0xefb   : > { %v2685_v33 = vpop.eup %2684 }
 0xefc   : > { %v1865_v35 = vmul.f32 %v2685_v33, %v1849_v21  ;;  %v1880_v38 = vadd.f32 %v2329_v36, %v1872_v34 }
 0xefe   : > { %v1873_v37 = vmul.f32 %v2328_v32, %v1865_v35 }
 0xf00   : > { %v1881_v39 = vadd.f32 %v2329_v36, %v1873_v37 }
 0xf02   : > { %v1882_v40 = vpack.c.bf16 %v1881_v39, %v1880_v38 }
 0xf04   : > { %2518 = vmatmul.mubr.msk.bf16.vlgmr.msra.gmra.mrb[36].mxu0 %vm712_vm1, %v1882_v40 }
 0xfd7   : > { %v1943_v47 = vpop.f32.mrb[36].mxu0 }
 0xfd8   : > { %v1944_v48 = vadd.f32 %v2330_v41, %v1943_v47  ;;  %v2519_v49 = vpop.f32.mrb[37].mxu0 }
 0xfd9   : > { %v1946_v50 = vpop.f32.mrb[38].mxu0 }
 0xfda   : > { %v1950_v51 = vmul.f32 %v1944_v48, %v1944_v48  ;;  %v1947_v52 = vadd.f32 %v2330_v41, %v1946_v50  ;;  %v2520_v53 = vpop.f32.mrb[39].mxu0 }
 0xfdc   : > { %v1952_v54 = vmul.f32 %v1950_v51, %v1944_v48  ;;  %v1951_v55 = vmul.f32 %v1947_v52, %v1947_v52 }
 0xfde   : > { %v1954_v56 = vmul.f32 0.044715, %v1952_v54  ;;  %v1953_v57 = vmul.f32 %v1951_v55, %v1947_v52 }
 0xfe0   : > { %v1956_v58 = vadd.f32 %v1954_v56, %v1944_v48  ;;  %v1955_v59 = vmul.f32 0.044715, %v1953_v57 }
 0xfe2   : > { %v1958_v60 = vmul.f32 0.7978846, %v1956_v58  ;;  %v1957_v17 = vadd.f32 %v1955_v59, %v1947_v52 }
 0xfe4   : > { %2686 = vtanh.f32 %v1958_v60  ;;  %v1959_v61 = vmul.f32 0.7978846, %v1957_v17 }
 0xfe6   : > { %2688 = vtanh.f32 %v1959_v61 }
 0xfee   : > { %v2687_v62 = vpop.eup %2686 }
 0xfef   : > { %v1962_v63 = vadd.f32 1.0, %v2687_v62 }
 0xff0   : > { %v2689_v0 = vpop.eup %2688 }
 0xff1   : > { %v1964_v1 = vmul.f32 0.5, %v1962_v63  ;;  %v1963_v4 = vadd.f32 1.0, %v2689_v0 }
 0xff3   : > { %v1965_v5 = vmul.f32 0.5, %v1963_v4  ;;  %v1966_v6 = vmul.f32 %v1964_v1, %v1944_v48 }
 0xff5   : > { %v1967_v7 = vmul.f32 %v1965_v5, %v1947_v52 }
 0xff7   : > { %v1968_v9 = vpack.c.bf16 %v1967_v7, %v1966_v6 }
 0xff9   : > { %2530 = vmatmul.mubr.msk.bf16.vlgmr.msra.gmra.mrb[36].mxu1 %vm2008_vm9, %v1968_v9 }
0x10cc   : > { %v2046_v12 = vpop.f32.mrb[36].mxu1 }
0x10cd   : > { %v2047_v13 = vadd.f32 %v2334_v10, %v2046_v12  ;;  %v2531_v15 = vpop.f32.mrb[37].mxu1  ;;  %2060 = sbr.rel (%p2340_p4) target bundleno = 4308 (0x10d4), region = 96 }
0x10ce   : > { %v2049_v16 = vpop.f32.mrb[38].mxu1 }
0x10cf   : > { %v2053_v18 = vadd.f32 %v2047_v13, %v3450_v8  ;;  %v2050_v2 = vadd.f32 %v2334_v10, %v2049_v16  ;;  %v2532_v20 = vpop.f32.mrb[39].mxu1 }
0x10d1   : > { %2055 = vst.msk [vmem:[#allocation2] sm:$0xff] %vm712_vm1, %v2053_v18  ;;  %v2054_v21 = vadd.f32 %v2050_v2, %v3453_v11  ;;  %2061 = vst.msk [vmem:[#allocation12] sm:$0xff] (!%p2340_p4), %vm712_vm1, %v2053_v18 }
0x10d3   : > { %2056 = vst.msk [vmem:[#allocation2 + $0x8] sm:$0xff] %vm712_vm1, %v2054_v21  ;;  %2062 = vst.msk [vmem:[#allocation12 + $0x8] sm:$0xff] (!%p2340_p4), %vm712_vm1, %v2054_v21 }
0x10d4 PF: > { %p2564_p7 = scmp.eq.s32.totalorder %s3086_s27, 1  ;;  %s2920_s30 = smov [#allocation12]  }
0x10d5   : > { %s2072_s24 = sshll.u32 %s2920_s30, 4  ;;  %s2073_s24 = int_to_ptr.vmem [resolvable:$true] %s2072_s24 }
0x10d6   : > { %s2808_s6 = scalar_lea.vmem %s2073_s24, 256  ;;  %p2815_p3 = scmp.lt.s32.totalorder %s2073_s24, %s2073_s24 }
0x10d7   : > { %p2809_p2 = scmp.ne.s32.totalorder %s2073_s24, %s2808_s6  ;;  %p2816_p10 = scmp.lt.s32.totalorder %s2808_s6, %s2808_s6 }
0x10d9   : > { %p2810_p8 = pnand %p2809_p2, %p2564_p7  ;;  %p2817_p12 = por %p2816_p10, %p2815_p3 }
0x10db   : > { %p2811_p13 = pneg %p2810_p8 }
0x10dd   : > { %p2818_p11 = pnand %p2817_p12, %p2811_p13 }
0x10df   : > { %2821 = shalt.err (!%p2818_p11)
}
0x10e0   : > { %s3604_s25 = sld [smem:[#allocation31_spill]] }
0x10e6   : > { %s3605_s7 = smov %s3604_s25  ;;  %s2822_s22 = scalar_lea.hbm %s3604_s25, 256 }
0x10e7   : > { %p2823_p5 = scmp.ne.s32.totalorder %s3605_s7, %s2822_s22  ;;  %p2828_p0 = scmp.lt.u32.totalorder %s2822_s22, %s3605_s7 }
0x10e9   : > { %p2824_p9 = pnand %p2823_p5, %p2564_p7 }
0x10eb   : > { %p2825_p6 = pneg %p2824_p9 }
0x10ed   : > { %p2830_p1 = pnand %p2828_p0, %p2825_p6 }
0x10ef   : > { %2833 = shalt.err (!%p2830_p1)
}
0x10f0   : > { %s2921_s8 = smov 128  }
0x10f1   : > { %2544 = dma.vmem_to_hbm [thread:$0]  (%p2564_p7), %s2073_s24, 256, %s3605_s7, [#allocation6], %s2921_s8, %s2921_s8, %s2917_s16  }
0x10f2   : > { %2871 = dma.done.wait (%p2564_p7), [#allocation6], 256  }
0x10f3   : > { %2873 = vsyncadd (%p2564_p7), [#allocation6], 4294967040 }
0x10f4 PF: > { %s3606_s14 = sld [smem:[#allocation19_spill]]  ;;  %s3607_s29 = sld [smem:[#allocation17_spill]] }
0x10f5   : > { %s3608_s27 = sld [smem:[#allocation21_spill]]  ;;  %s3609_s28 = sld [smem:[#allocation18_spill]] }
0x10f6   : > { %s3610_s15 = sld [smem:[#allocation20_spill]]  ;;  %s3611_s25 = smov %s2880_s26 }
0x10fa   : > { %s31_s30 = sadd.s32 1, %s3606_s14   ;;  %s3612_s26 = smov %s3607_s29 }
0x10fb   : > { %p28_p4 = scmp.ge.s32.totalorder %s31_s30, 4  }
0x10fc   : > { %s3613_s29 = smov %s3610_s15 }
0x10fd   :  { %30 = sbr.rel (!%p28_p4) target bundleno = 19 (0x13), region = 175 }
0x1104   :  { %2088 = vsyncpa [#allocation5], 1 }
0x1105   :  { %2090 = vsyncpa [#allocation5 + $0x1], 1 }
0x1106   :  { %2091 = vsyncpa [#allocation8], 1 }
0x1107   :  { %2093 = vsyncpa [#allocation8 + $0x1], 1 }
0x1108   :  { %2094 = vsyncpa [#allocation11], 1 }
0x1109   :  { %2096 = vsyncpa [#allocation11 + $0x1], 1 }
0x110a   :  { %2097 = vsyncpa [#allocation6], 1 }
0x110b   :  { %2099 = vsyncpa [#allocation6 + $0x1], 1 }

</bundles_post_ra>
